<compile_context>
chip_gen: v7x
topology: tpu7x:2x2x1
jax: 0.10.0
libtpu: 0.0.40
codegen_flags: <defaults>
</compile_context>

<pallas_src>
import functools
import math

import jax
import jax.numpy as jnp
import numpy as np
from jax import lax
from jax.experimental import pallas as pl
from jax.experimental.pallas import tpu as pltpu

HID = 128  # fc1 hidden width: nn.Linear(view_out + feats, 128)


# ----------------------------------------------------------------------------
# Fused kernel
# ----------------------------------------------------------------------------
def _dqn_fused_kernel(x_ref, w1_ref, b1_ref, w2_ref, b2_ref,
                      wff_ref, bfc_ref, nb_ref, nsb_ref, neb_ref, feats_ref,
                      wfc_hbm, noisy_hbm,
                      o_ref,
                      h1p_ref, wfc_vmem, noisy_vmem, sem,
                      *, B, KH1, HO1, KH2, HO2, CHUNK):
    f32 = jnp.float32
    bf16 = jnp.bfloat16

    # --- Start late-stage weight DMAs so they overlap with conv compute. ----
    # wfc (~1 MB bf16) and the noisy stack live in HBM (memory_space=ANY) and
    # land in VMEM scratch while conv1/conv2 occupy the MXU.
    wfc_cp = pltpu.make_async_copy(wfc_hbm, wfc_vmem, sem.at[0])
    noisy_cp = pltpu.make_async_copy(noisy_hbm, noisy_vmem, sem.at[1])
    wfc_cp.start()
    noisy_cp.start()

    # --- conv1 + ReLU : rows (ho1, b), cols (w_padded, c1). -----------------
    # conv2's width padding is folded into w1/b1 (their border column blocks
    # are zero and ReLU(0) = 0), so h1 already carries the zero side columns.
    acc1 = jnp.dot(x_ref[0:HO1 * B, :], w1_ref[0], preferred_element_type=f32)
    for i in range(1, KH1):
        acc1 = acc1 + jnp.dot(x_ref[i * B:(i + HO1) * B, :], w1_ref[i],
                              preferred_element_type=f32)
    h1 = jnp.maximum(acc1 + b1_ref[...], 0.0)

    # conv2's height padding: zero only the two border bands (the full-buffer
    # zero fill was redundant vst traffic); conv1 rows fill the middle band.
    wcols = h1p_ref.shape[1]
    h1p_ref[0:B, :] = jnp.zeros((B, wcols), f32)
    h1p_ref[(HO1 + 1) * B:(HO1 + 2) * B, :] = jnp.zeros((B, wcols), f32)
    h1p_ref[B:(HO1 + 1) * B, :] = h1

    # --- conv2 + ReLU : rows (ho2, b), cols (wo2, c2) padded to CHUNK lanes. -
    acc2 = jnp.dot(h1p_ref[0:HO2 * B, :].astype(bf16), w2_ref[0],
                   preferred_element_type=f32)
    for i in range(1, KH2):
        acc2 = acc2 + jnp.dot(h1p_ref[i * B:(i + HO2) * B, :].astype(bf16),
                              w2_ref[i], preferred_element_type=f32)
    # h2 is tiny (HO2*B x CHUNK bf16): keep it as a register value.
    h2 = jnp.maximum(acc2 + b2_ref[...], 0.0).astype(bf16)

    # --- Linear(conv_out ++ feats, 128) + ReLU. ------------------------------
    # The reference model's NCHW flatten order is folded into wfc's row
    # permutation; h2's padding columns hit zero rows of wfc.
    acc3 = jnp.dot(feats_ref[...], wff_ref[...], preferred_element_type=f32)
    wfc_cp.wait()                      # fc1 weight slab must have landed
    for r in range(HO2):
        acc3 = acc3 + jnp.dot(h2[r * B:(r + 1) * B, :],
                              wfc_vmem[r * CHUNK:(r + 1) * CHUNK, :],
                              preferred_element_type=f32)
    hfc = jnp.maximum(acc3 + bfc_ref[...], 0.0).astype(bf16)

    # --- NoisyLinear (training mode). ----------------------------------------
    # w_eff = w + sigma*eps built in f32 on the VPU (v5e-safe), cast to bf16
    # only for the MXU.  Action dim is zero-padded to 128 lanes -> unmasked
    # final store.
    noisy_cp.wait()
    nw = noisy_vmem[0].astype(f32)
    nsw = noisy_vmem[1].astype(f32)
    new = noisy_vmem[2].astype(f32)
    w_eff = (nw + nsw * new).astype(bf16)
    b_eff = nb_ref[...] + nsb_ref[...] * neb_ref[...]
    o_ref[...] = (jnp.dot(hfc, w_eff, preferred_element_type=f32)
                  + b_eff).astype(o_ref.dtype)


# ----------------------------------------------------------------------------
# Forward wrapper
# ----------------------------------------------------------------------------
def dqn_noisy_forward(packed, view_nchw, feats, *, dims):
    B, C_in, H, W = view_nchw.shape
    HO1, WO1, C1 = dims["HO1"], dims["WO1"], dims["C1"]
    HO2 = dims["HO2"]
    KH1, KH2 = dims["KH1"], dims["KH2"]
    CHUNK = dims["CHUNK"]
    n_actions = dims["n_actions"]
    WP1 = WO1 + 2
    a_pad = packed["noisy_pack"].shape[2]

    # Per-call layout glue: NCHW -> rows (h, b), cols (w, c_in); bf16 MXU feed.
    x2d = jnp.transpose(view_nchw, (2, 0, 3, 1)).reshape(H * B, W * C_in)
    x2d = x2d.astype(jnp.bfloat16)
    feats_bf = feats.astype(jnp.bfloat16)

    vmem_ops = (x2d, packed["w1_big"], packed["b1_row"],
                packed["w2_big"], packed["b2_row"],
                packed["wff"], packed["bfc"],
                packed["noisy_b"], packed["noisy_sb"], packed["noisy_eb"],
                feats_bf)
    hbm_ops = (packed["wfc"], packed["noisy_pack"])
    operands = vmem_ops + hbm_ops

    vmem_spec = pl.BlockSpec(memory_space=pltpu.MemorySpace.VMEM)
    hbm_spec = pl.BlockSpec(memory_space=pl.ANY)
    in_specs = [vmem_spec] * len(vmem_ops) + [hbm_spec] * len(hbm_ops)

    flops = 2 * (KH1 * (HO1 * B) * (W * C_in) * (WP1 * C1)
                 + KH2 * (HO2 * B) * (WP1 * C1) * CHUNK
                 + (HO2 * CHUNK) * B * HID
                 + B * feats.shape[1] * HID
                 + B * HID * a_pad)
    bytes_accessed = int(sum(int(np.prod(o.shape)) * o.dtype.itemsize
                             for o in operands) + B * a_pad * 4)

    kernel = functools.partial(_dqn_fused_kernel, B=B, KH1=KH1, HO1=HO1,
                               KH2=KH2, HO2=HO2, CHUNK=CHUNK)
    out_pad = pl.pallas_call(
        kernel,
        out_shape=jax.ShapeDtypeStruct((B, a_pad), jnp.float32),
        in_specs=in_specs,
        out_specs=pl.BlockSpec(memory_space=pltpu.MemorySpace.VMEM),
        scratch_shapes=[
            pltpu.VMEM(((HO1 + 2) * B, WP1 * C1), jnp.float32),   # padded h1
            pltpu.VMEM((HO2 * CHUNK, HID), jnp.bfloat16),         # wfc landing
            pltpu.VMEM((3, HID, a_pad), jnp.bfloat16),            # noisy landing
            pltpu.SemaphoreType.DMA((2,)),
        ],
        cost_estimate=pl.CostEstimate(flops=flops, transcendentals=0,
                                      bytes_accessed=bytes_accessed),
    )(*operands)
    return out_pad[:, :n_actions]


# ----------------------------------------------------------------------------
# Parameters (synthetic, deterministic init matching the module's shapes)
# ----------------------------------------------------------------------------
def init_params(key, view_shape, feats_dim, n_actions, sigma_init=0.017):
    c_in, H, W = view_shape
    C1, C2 = 32, 16
    KH1 = KW1 = 3
    KH2 = KW2 = 2
    HO1, WO1 = H - KH1 + 1, W - KW1 + 1                  # conv1: pad=0
    HO2, WO2 = HO1 + 2 - KH2 + 1, WO1 + 2 - KW2 + 1      # conv2: pad=1
    view_out = C2 * HO2 * WO2
    fc_in = view_out + feats_dim
    CHUNK = ((WO2 * C2 + 127) // 128) * 128              # lane-dense h2 width

    ks = jax.random.split(key, 10)

    def uni(k, shape, fan_in):
        std = math.sqrt(3.0 / fan_in)
        return jax.random.uniform(k, shape, jnp.float32, -std, std)

    params = dict(
        conv1_w=uni(ks[0], (KH1, KW1, c_in, C1), c_in * KH1 * KW1),
        conv1_b=uni(ks[1], (C1,), c_in * KH1 * KW1),
        conv2_w=uni(ks[2], (KH2, KW2, C1, C2), C1 * KH2 * KW2),
        conv2_b=uni(ks[3], (C2,), C1 * KH2 * KW2),
        fc1_w=uni(ks[4], (fc_in, HID), fc_in),           # stored [in, out]
        fc1_b=uni(ks[5], (HID,), fc_in),
        # NoisyLinear(128, n_actions): PyTorch layout [out, in]
        noisy_w=uni(ks[6], (n_actions, HID), HID),
        noisy_b=uni(ks[7], (n_actions,), HID),
        noisy_sigma_w=jnp.full((n_actions, HID), sigma_init, jnp.float32),
        noisy_sigma_b=jnp.full((n_actions,), sigma_init, jnp.float32),
        # TODO(synk): PyTorch calls NoisyLinear.sample_noise() per step; here
        # epsilon is sampled once, deterministically, at init (fixed buffer).
        noisy_eps_w=jax.random.normal(ks[8], (n_actions, HID), jnp.float32),
        noisy_eps_b=jax.random.normal(ks[9], (n_actions,), jnp.float32),
    )
    dims = dict(C_in=c_in, H=H, W=W, C1=C1, C2=C2,
                KH1=KH1, KW1=KW1, KH2=KH2, KW2=KW2,
                HO1=HO1, WO1=WO1, HO2=HO2, WO2=WO2, CHUNK=CHUNK,
                n_actions=n_actions, feats_dim=feats_dim,
                view_out=view_out, fc_in=fc_in)
    return params, dims


# ----------------------------------------------------------------------------
# One-time host-side weight packing (Toeplitz expansion, padding folds,
# flatten-order fold, 256-lane conv2 chunk padding, bf16 storage).
# ----------------------------------------------------------------------------
def pack_params(params, dims):
    C_in, W = dims["C_in"], dims["W"]
    C1, C2 = dims["C1"], dims["C2"]
    KH1, KW1 = dims["KH1"], dims["KW1"]
    KH2, KW2 = dims["KH2"], dims["KW2"]
    WO1, HO2, WO2 = dims["WO1"], dims["HO2"], dims["WO2"]
    CHUNK = dims["CHUNK"]
    n_actions = dims["n_actions"]
    WP1 = WO1 + 2                      # conv1 output width incl. conv2 padding

    w1 = np.asarray(params["conv1_w"], np.float32)       # [KH1, KW1, C_in, C1]
    b1 = np.asarray(params["conv1_b"], np.float32)
    w2 = np.asarray(params["conv2_w"], np.float32)       # [KH2, KW2, C1, C2]
    b2 = np.asarray(params["conv2_b"], np.float32)

    # conv1: fold the width shift + channel mixing into a per-kernel-row dense
    # matrix; border column blocks stay zero == conv2's width padding.
    w1_big = np.zeros((KH1, W * C_in, WP1 * C1), np.float32)
    b1_row = np.zeros((1, WP1 * C1), np.float32)
    for i in range(KH1):
        for wo in range(WO1):
            wp = wo + 1
            for j in range(KW1):
                w_in = wo + j
                w1_big[i, w_in * C_in:(w_in + 1) * C_in,
                       wp * C1:(wp + 1) * C1] = w1[i, j]
    for wo in range(WO1):
        b1_row[0, (wo + 1) * C1:(wo + 2) * C1] = b1

    # conv2 (padding=1): width padding from the zero columns above, height
    # padding from the zero bands in the kernel scratch.  Output columns are
    # padded WO2*C2 -> CHUNK (zeros) for unmasked, lane-dense MXU output.
    w2_big = np.zeros((KH2, WP1 * C1, CHUNK), np.float32)
    b2_row = np.zeros((1, CHUNK), np.float32)
    for i in range(KH2):
        for wo2 in range(WO2):
            for j in range(KW2):
                wp = wo2 + j
                w2_big[i, wp * C1:(wp + 1) * C1,
                       wo2 * C2:(wo2 + 1) * C2] = w2[i, j]
    for wo2 in range(WO2):
        b2_row[0, wo2 * C2:(wo2 + 1) * C2] = b2

    # fc1: fold torch's NCHW flatten order (conv_out.view(B,-1)) into a row
    # permutation of the weight; each ho2 chunk is zero-padded to CHUNK rows
    # to mirror h2's padded columns.
    fc1_w = np.asarray(params["fc1_w"], np.float32)      # [view_out+feats, 128]
    view_out = HO2 * WO2 * C2
    r = np.arange(WO2 * C2)
    wo2_idx, c2_idx = r // C2, r % C2
    wfc = np.zeros((HO2 * CHUNK, HID), np.float32)
    for ho2 in range(HO2):
        src = c2_idx * (HO2 * WO2) + ho2 * WO2 + wo2_idx  # NCHW flatten index
        wfc[ho2 * CHUNK:ho2 * CHUNK + WO2 * C2] = fc1_w[src]
    wff = fc1_w[view_out:]                               # [feats, 128]
    bfc = np.asarray(params["fc1_b"], np.float32)[None, :]

    # NoisyLinear: transpose to [in, out], zero-pad the action dim to 128
    # lanes, and stack (w, sigma, eps) for a single overlapped DMA.
    a_pad = max(HID, ((n_actions + 127) // 128) * 128)

    def pad_t(m):
        mp = np.zeros((a_pad, HID), np.float32)
        mp[:n_actions] = np.asarray(m, np.float32)
        return mp.T                                      # [128(in), a_pad(out)]

    def pad_v(v):
        vp = np.zeros((1, a_pad), np.float32)
        vp[0, :n_actions] = np.asarray(v, np.float32)
        return vp

    noisy_pack = np.stack([pad_t(params["noisy_w"]),
                           pad_t(params["noisy_sigma_w"]),
                           pad_t(params["noisy_eps_w"])])  # [3, 128, a_pad]

    bf16 = jnp.bfloat16
    return dict(
        w1_big=jnp.asarray(w1_big, bf16), b1_row=jnp.asarray(b1_row),
        w2_big=jnp.asarray(w2_big, bf16), b2_row=jnp.asarray(b2_row),
        wfc=jnp.asarray(wfc, bf16), wff=jnp.asarray(wff, bf16),
        bfc=jnp.asarray(bfc),
        noisy_pack=jnp.asarray(noisy_pack, bf16),
        noisy_b=jnp.asarray(pad_v(params["noisy_b"])),
        noisy_sb=jnp.asarray(pad_v(params["noisy_sigma_b"])),
        noisy_eb=jnp.asarray(pad_v(params["noisy_eps_b"])),
    )


# ----------------------------------------------------------------------------
# Pure-JAX f32 reference (mirrors DQNNoisyModel.forward, training-mode noisy)
# ----------------------------------------------------------------------------
def ref_forward(params, view, feats):
    dn = ("NCHW", "OIHW", "NCHW")
    hi = lax.Precision.HIGHEST
    w1t = jnp.transpose(params["conv1_w"], (3, 2, 0, 1))
    h = lax.conv_general_dilated(view, w1t, (1, 1), "VALID",
                                 dimension_numbers=dn, precision=hi)
    h = jax.nn.relu(h + params["conv1_b"][None, :, None, None])
    w2t = jnp.transpose(params["conv2_w"], (3, 2, 0, 1))
    h = lax.conv_general_dilated(h, w2t, (1, 1), ((1, 1), (1, 1)),
                                 dimension_numbers=dn, precision=hi)
    h = jax.nn.relu(h + params["conv2_b"][None, :, None, None])
    fc_in = jnp.concatenate([h.reshape(h.shape[0], -1), feats], axis=1)
    hfc = jax.nn.relu(jnp.dot(fc_in, params["fc1_w"], precision=hi)
                      + params["fc1_b"])
    w_eff = params["noisy_w"] + params["noisy_sigma_w"] * params["noisy_eps_w"]
    b_eff = params["noisy_b"] + params["noisy_sigma_b"] * params["noisy_eps_b"]
    return jnp.dot(hfc, w_eff.T, precision=hi) + b_eff


if __name__ == "__main__":
    key = jax.random.PRNGKey(0)
    view_shape = (4, 16, 16)   # (C, H, W)
    feats_dim = 8
    n_actions = 4
    batch = 2

    k_params, k_view, k_feats = jax.random.split(key, 3)
    params, dims = init_params(k_params, view_shape, feats_dim, n_actions)
    packed = pack_params(params, dims)

    view = jax.random.normal(k_view, (batch,) + view_shape, jnp.float32)  # NCHW
    feats = jax.random.normal(k_feats, (batch, feats_dim), jnp.float32)

    fwd = jax.jit(functools.partial(dqn_noisy_forward, dims=dims))
    q_values = jax.block_until_ready(fwd(packed, view, feats))

    assert q_values.shape == (batch, n_actions), q_values.shape
    assert q_values.dtype == jnp.float32

    q_ref = jax.block_until_ready(ref_forward(params, view, feats))
    # bf16 MXU inputs with f32 accumulation -> bf16-appropriate tolerance vs
    # the f32 reference.
    if not np.allclose(np.asarray(q_values), np.asarray(q_ref),
                       rtol=3e-2, atol=3e-2):
        raise AssertionError(
            f"mismatch:\n{np.asarray(q_values)}\nvs\n{np.asarray(q_ref)}")
    print("KERNEL_OK")
</pallas_src>

<mosaic_0001>
module attributes {stable_mosaic.version = 11 : i64} {
  func.func @_dqn_fused_kernel(%arg0: memref<32x64xbf16, #tpu.memory_space<vmem>>, %arg1: memref<3x64x512xbf16, #tpu.memory_space<vmem>>, %arg2: memref<1x512xf32, #tpu.memory_space<vmem>>, %arg3: memref<2x512x256xbf16, #tpu.memory_space<vmem>>, %arg4: memref<1x256xf32, #tpu.memory_space<vmem>>, %arg5: memref<8x128xbf16, #tpu.memory_space<vmem>>, %arg6: memref<1x128xf32, #tpu.memory_space<vmem>>, %arg7: memref<1x128xf32, #tpu.memory_space<vmem>>, %arg8: memref<1x128xf32, #tpu.memory_space<vmem>>, %arg9: memref<1x128xf32, #tpu.memory_space<vmem>>, %arg10: memref<2x8xbf16, #tpu.memory_space<vmem>>, %arg11: memref<3840x128xbf16, #tpu.memory_space<any>>, %arg12: memref<3x128x128xbf16, #tpu.memory_space<any>>, %arg13: memref<2x128xf32, #tpu.memory_space<vmem>>, %arg14: memref<32x512xf32, #tpu.memory_space<vmem>>, %arg15: memref<3840x128xbf16, #tpu.memory_space<vmem>>, %arg16: memref<3x128x128xbf16, #tpu.memory_space<vmem>>, %arg17: memref<2x!tpu.dma_semaphore, #tpu.memory_space<semaphore_mem>>) attributes {dimension_semantics = [], scalar_prefetch = 0 : i64, scratch_operands = 4 : i64, tpu.core_type = #tpu.core_type<tc>} {
    %c0_i32 = arith.constant 0 : i32
    %0 = tpu.memref_slice %arg17[%c0_i32] : memref<2x!tpu.dma_semaphore, #tpu.memory_space<semaphore_mem>> -> memref<1x!tpu.dma_semaphore, #tpu.memory_space<semaphore_mem>>
    %1 = tpu.memref_squeeze %0 : memref<1x!tpu.dma_semaphore, #tpu.memory_space<semaphore_mem>> -> memref<!tpu.dma_semaphore, #tpu.memory_space<semaphore_mem>>
    tpu.enqueue_dma source(%arg11 : memref<3840x128xbf16, #tpu.memory_space<any>>) target(%arg15 : memref<3840x128xbf16, #tpu.memory_space<vmem>>) target_semaphore(%1 : memref<!tpu.dma_semaphore, #tpu.memory_space<semaphore_mem>>)
    %c1_i32 = arith.constant 1 : i32
    %2 = tpu.memref_slice %arg17[%c1_i32] : memref<2x!tpu.dma_semaphore, #tpu.memory_space<semaphore_mem>> -> memref<1x!tpu.dma_semaphore, #tpu.memory_space<semaphore_mem>>
    %3 = tpu.memref_squeeze %2 : memref<1x!tpu.dma_semaphore, #tpu.memory_space<semaphore_mem>> -> memref<!tpu.dma_semaphore, #tpu.memory_space<semaphore_mem>>
    tpu.enqueue_dma source(%arg12 : memref<3x128x128xbf16, #tpu.memory_space<any>>) target(%arg16 : memref<3x128x128xbf16, #tpu.memory_space<vmem>>) target_semaphore(%3 : memref<!tpu.dma_semaphore, #tpu.memory_space<semaphore_mem>>)
    %c0 = arith.constant 0 : index
    %c0_0 = arith.constant 0 : index
    %4 = vector.load %arg0[%c0, %c0_0] : memref<32x64xbf16, #tpu.memory_space<vmem>>, vector<28x64xbf16>
    %c0_1 = arith.constant 0 : index
    %c0_2 = arith.constant 0 : index
    %c0_3 = arith.constant 0 : index
    %5 = vector.load %arg1[%c0_1, %c0_2, %c0_3] : memref<3x64x512xbf16, #tpu.memory_space<vmem>>, vector<1x64x512xbf16>
    %6 = vector.shape_cast %5 : vector<1x64x512xbf16> to vector<64x512xbf16>
    %cst = arith.constant dense<0.000000e+00> : vector<28x512xf32>
    %7 = tpu.matmul %4, %6, %cst {dimension_numbers = #tpu.dot_dimension_numbers<[1], [0], [0], [1], [0, 0, 1, 1], [], []>} : vector<28x64xbf16>, vector<64x512xbf16>, vector<28x512xf32> -> vector<28x512xf32>
    %c2 = arith.constant 2 : index
    %c0_4 = arith.constant 0 : index
    %8 = vector.load %arg0[%c2, %c0_4] : memref<32x64xbf16, #tpu.memory_space<vmem>>, vector<28x64xbf16>
    %c1 = arith.constant 1 : index
    %c0_5 = arith.constant 0 : index
    %c0_6 = arith.constant 0 : index
    %9 = vector.load %arg1[%c1, %c0_5, %c0_6] : memref<3x64x512xbf16, #tpu.memory_space<vmem>>, vector<1x64x512xbf16>
    %10 = vector.shape_cast %9 : vector<1x64x512xbf16> to vector<64x512xbf16>
    %cst_7 = arith.constant dense<0.000000e+00> : vector<28x512xf32>
    %11 = tpu.matmul %8, %10, %cst_7 {dimension_numbers = #tpu.dot_dimension_numbers<[1], [0], [0], [1], [0, 0, 1, 1], [], []>} : vector<28x64xbf16>, vector<64x512xbf16>, vector<28x512xf32> -> vector<28x512xf32>
    %12 = arith.addf %7, %11 : vector<28x512xf32>
    %c4 = arith.constant 4 : index
    %c0_8 = arith.constant 0 : index
    %13 = vector.load %arg0[%c4, %c0_8] : memref<32x64xbf16, #tpu.memory_space<vmem>>, vector<28x64xbf16>
    %c2_9 = arith.constant 2 : index
    %c0_10 = arith.constant 0 : index
    %c0_11 = arith.constant 0 : index
    %14 = vector.load %arg1[%c2_9, %c0_10, %c0_11] : memref<3x64x512xbf16, #tpu.memory_space<vmem>>, vector<1x64x512xbf16>
    %15 = vector.shape_cast %14 : vector<1x64x512xbf16> to vector<64x512xbf16>
    %cst_12 = arith.constant dense<0.000000e+00> : vector<28x512xf32>
    %16 = tpu.matmul %13, %15, %cst_12 {dimension_numbers = #tpu.dot_dimension_numbers<[1], [0], [0], [1], [0, 0, 1, 1], [], []>} : vector<28x64xbf16>, vector<64x512xbf16>, vector<28x512xf32> -> vector<28x512xf32>
    %17 = arith.addf %12, %16 : vector<28x512xf32>
    %c0_13 = arith.constant 0 : index
    %c0_14 = arith.constant 0 : index
    %18 = vector.load %arg2[%c0_13, %c0_14] : memref<1x512xf32, #tpu.memory_space<vmem>>, vector<1x512xf32>
    %19 = vector.broadcast %18 : vector<1x512xf32> to vector<28x512xf32>
    %20 = arith.addf %17, %19 : vector<28x512xf32>
    %cst_15 = arith.constant 0.000000e+00 : f32
    %21 = vector.broadcast %cst_15 : f32 to vector<28x512xf32>
    %22 = arith.maximumf %20, %21 : vector<28x512xf32>
    %cst_16 = arith.constant 0.000000e+00 : f32
    %23 = vector.broadcast %cst_16 : f32 to vector<2x512xf32>
    %c0_17 = arith.constant 0 : index
    %c0_18 = arith.constant 0 : index
    %24 = vector.load %arg14[%c0_17, %c0_18] : memref<32x512xf32, #tpu.memory_space<vmem>>, vector<2x512xf32>
    tpu.vector_store %arg14[%c0_17, %c0_18], %23 {strides = array<i32>} : memref<32x512xf32, #tpu.memory_space<vmem>>, vector<2x512xf32>,
    %cst_19 = arith.constant 0.000000e+00 : f32
    %25 = vector.broadcast %cst_19 : f32 to vector<2x512xf32>
    %c30 = arith.constant 30 : index
    %c0_20 = arith.constant 0 : index
    %26 = vector.load %arg14[%c30, %c0_20] : memref<32x512xf32, #tpu.memory_space<vmem>>, vector<2x512xf32>
    tpu.vector_store %arg14[%c30, %c0_20], %25 {strides = array<i32>} : memref<32x512xf32, #tpu.memory_space<vmem>>, vector<2x512xf32>,
    %c2_21 = arith.constant 2 : index
    %c0_22 = arith.constant 0 : index
    %27 = vector.load %arg14[%c2_21, %c0_22] : memref<32x512xf32, #tpu.memory_space<vmem>>, vector<28x512xf32>
    tpu.vector_store %arg14[%c2_21, %c0_22], %22 {strides = array<i32>} : memref<32x512xf32, #tpu.memory_space<vmem>>, vector<28x512xf32>,
    %c0_23 = arith.constant 0 : index
    %c0_24 = arith.constant 0 : index
    %28 = vector.load %arg14[%c0_23, %c0_24] : memref<32x512xf32, #tpu.memory_space<vmem>>, vector<30x512xf32>
    %29 = arith.truncf %28 : vector<30x512xf32> to vector<30x512xbf16>
    %c0_25 = arith.constant 0 : index
    %c0_26 = arith.constant 0 : index
    %c0_27 = arith.constant 0 : index
    %30 = vector.load %arg3[%c0_25, %c0_26, %c0_27] : memref<2x512x256xbf16, #tpu.memory_space<vmem>>, vector<1x512x256xbf16>
    %31 = vector.shape_cast %30 : vector<1x512x256xbf16> to vector<512x256xbf16>
    %cst_28 = arith.constant dense<0.000000e+00> : vector<30x256xf32>
    %32 = tpu.matmul %29, %31, %cst_28 {dimension_numbers = #tpu.dot_dimension_numbers<[1], [0], [0], [1], [0, 0, 1, 1], [], []>} : vector<30x512xbf16>, vector<512x256xbf16>, vector<30x256xf32> -> vector<30x256xf32>
    %c2_29 = arith.constant 2 : index
    %c0_30 = arith.constant 0 : index
    %33 = vector.load %arg14[%c2_29, %c0_30] : memref<32x512xf32, #tpu.memory_space<vmem>>, vector<30x512xf32>
    %34 = arith.truncf %33 : vector<30x512xf32> to vector<30x512xbf16>
    %c1_31 = arith.constant 1 : index
    %c0_32 = arith.constant 0 : index
    %c0_33 = arith.constant 0 : index
    %35 = vector.load %arg3[%c1_31, %c0_32, %c0_33] : memref<2x512x256xbf16, #tpu.memory_space<vmem>>, vector<1x512x256xbf16>
    %36 = vector.shape_cast %35 : vector<1x512x256xbf16> to vector<512x256xbf16>
    %cst_34 = arith.constant dense<0.000000e+00> : vector<30x256xf32>
    %37 = tpu.matmul %34, %36, %cst_34 {dimension_numbers = #tpu.dot_dimension_numbers<[1], [0], [0], [1], [0, 0, 1, 1], [], []>} : vector<30x512xbf16>, vector<512x256xbf16>, vector<30x256xf32> -> vector<30x256xf32>
    %38 = arith.addf %32, %37 : vector<30x256xf32>
    %c0_35 = arith.constant 0 : index
    %c0_36 = arith.constant 0 : index
    %39 = vector.load %arg4[%c0_35, %c0_36] : memref<1x256xf32, #tpu.memory_space<vmem>>, vector<1x256xf32>
    %40 = vector.broadcast %39 : vector<1x256xf32> to vector<30x256xf32>
    %41 = arith.addf %38, %40 : vector<30x256xf32>
    %cst_37 = arith.constant 0.000000e+00 : f32
    %42 = vector.broadcast %cst_37 : f32 to vector<30x256xf32>
    %43 = arith.maximumf %41, %42 : vector<30x256xf32>
    %44 = arith.truncf %43 : vector<30x256xf32> to vector<30x256xbf16>
    %c0_38 = arith.constant 0 : index
    %c0_39 = arith.constant 0 : index
    %45 = vector.load %arg10[%c0_38, %c0_39] : memref<2x8xbf16, #tpu.memory_space<vmem>>, vector<2x8xbf16>
    %c0_40 = arith.constant 0 : index
    %c0_41 = arith.constant 0 : index
    %46 = vector.load %arg5[%c0_40, %c0_41] : memref<8x128xbf16, #tpu.memory_space<vmem>>, vector<8x128xbf16>
    %cst_42 = arith.constant dense<0.000000e+00> : vector<2x128xf32>
    %47 = tpu.matmul %45, %46, %cst_42 {dimension_numbers = #tpu.dot_dimension_numbers<[1], [0], [0], [1], [0, 0, 1, 1], [], []>} : vector<2x8xbf16>, vector<8x128xbf16>, vector<2x128xf32> -> vector<2x128xf32>
    %c0_i32_43 = arith.constant 0 : i32
    %48 = tpu.memref_slice %arg17[%c0_i32_43] : memref<2x!tpu.dma_semaphore, #tpu.memory_space<semaphore_mem>> -> memref<1x!tpu.dma_semaphore, #tpu.memory_space<semaphore_mem>>
    %49 = tpu.memref_squeeze %48 : memref<1x!tpu.dma_semaphore, #tpu.memory_space<semaphore_mem>> -> memref<!tpu.dma_semaphore, #tpu.memory_space<semaphore_mem>>
    tpu.wait_dma2 semaphore(%49 : memref<!tpu.dma_semaphore, #tpu.memory_space<semaphore_mem>>) src(%arg11 : memref<3840x128xbf16, #tpu.memory_space<any>>) dst(%arg15 : memref<3840x128xbf16, #tpu.memory_space<vmem>>)
    %50 = vector.extract_strided_slice %44 {offsets = [0, 0], sizes = [2, 256], strides = [1, 1]} : vector<30x256xbf16> to vector<2x256xbf16>
    %c0_44 = arith.constant 0 : index
    %c0_45 = arith.constant 0 : index
    %51 = vector.load %arg15[%c0_44, %c0_45] : memref<3840x128xbf16, #tpu.memory_space<vmem>>, vector<256x128xbf16>
    %cst_46 = arith.constant dense<0.000000e+00> : vector<2x128xf32>
    %52 = tpu.matmul %50, %51, %cst_46 {dimension_numbers = #tpu.dot_dimension_numbers<[1], [0], [0], [1], [0, 0, 1, 1], [], []>} : vector<2x256xbf16>, vector<256x128xbf16>, vector<2x128xf32> -> vector<2x128xf32>
    %53 = arith.addf %47, %52 : vector<2x128xf32>
    %54 = vector.extract_strided_slice %44 {offsets = [2, 0], sizes = [2, 256], strides = [1, 1]} : vector<30x256xbf16> to vector<2x256xbf16>
    %c256 = arith.constant 256 : index
    %c0_47 = arith.constant 0 : index
    %55 = vector.load %arg15[%c256, %c0_47] : memref<3840x128xbf16, #tpu.memory_space<vmem>>, vector<256x128xbf16>
    %cst_48 = arith.constant dense<0.000000e+00> : vector<2x128xf32>
    %56 = tpu.matmul %54, %55, %cst_48 {dimension_numbers = #tpu.dot_dimension_numbers<[1], [0], [0], [1], [0, 0, 1, 1], [], []>} : vector<2x256xbf16>, vector<256x128xbf16>, vector<2x128xf32> -> vector<2x128xf32>
    %57 = arith.addf %53, %56 : vector<2x128xf32>
    %58 = vector.extract_strided_slice %44 {offsets = [4, 0], sizes = [2, 256], strides = [1, 1]} : vector<30x256xbf16> to vector<2x256xbf16>
    %c512 = arith.constant 512 : index
    %c0_49 = arith.constant 0 : index
    %59 = vector.load %arg15[%c512, %c0_49] : memref<3840x128xbf16, #tpu.memory_space<vmem>>, vector<256x128xbf16>
    %cst_50 = arith.constant dense<0.000000e+00> : vector<2x128xf32>
    %60 = tpu.matmul %58, %59, %cst_50 {dimension_numbers = #tpu.dot_dimension_numbers<[1], [0], [0], [1], [0, 0, 1, 1], [], []>} : vector<2x256xbf16>, vector<256x128xbf16>, vector<2x128xf32> -> vector<2x128xf32>
    %61 = arith.addf %57, %60 : vector<2x128xf32>
    %62 = vector.extract_strided_slice %44 {offsets = [6, 0], sizes = [2, 256], strides = [1, 1]} : vector<30x256xbf16> to vector<2x256xbf16>
    %c768 = arith.constant 768 : index
    %c0_51 = arith.constant 0 : index
    %63 = vector.load %arg15[%c768, %c0_51] : memref<3840x128xbf16, #tpu.memory_space<vmem>>, vector<256x128xbf16>
    %cst_52 = arith.constant dense<0.000000e+00> : vector<2x128xf32>
    %64 = tpu.matmul %62, %63, %cst_52 {dimension_numbers = #tpu.dot_dimension_numbers<[1], [0], [0], [1], [0, 0, 1, 1], [], []>} : vector<2x256xbf16>, vector<256x128xbf16>, vector<2x128xf32> -> vector<2x128xf32>
    %65 = arith.addf %61, %64 : vector<2x128xf32>
    %66 = vector.extract_strided_slice %44 {offsets = [8, 0], sizes = [2, 256], strides = [1, 1]} : vector<30x256xbf16> to vector<2x256xbf16>
    %c1024 = arith.constant 1024 : index
    %c0_53 = arith.constant 0 : index
    %67 = vector.load %arg15[%c1024, %c0_53] : memref<3840x128xbf16, #tpu.memory_space<vmem>>, vector<256x128xbf16>
    %cst_54 = arith.constant dense<0.000000e+00> : vector<2x128xf32>
    %68 = tpu.matmul %66, %67, %cst_54 {dimension_numbers = #tpu.dot_dimension_numbers<[1], [0], [0], [1], [0, 0, 1, 1], [], []>} : vector<2x256xbf16>, vector<256x128xbf16>, vector<2x128xf32> -> vector<2x128xf32>
    %69 = arith.addf %65, %68 : vector<2x128xf32>
    %70 = vector.extract_strided_slice %44 {offsets = [10, 0], sizes = [2, 256], strides = [1, 1]} : vector<30x256xbf16> to vector<2x256xbf16>
    %c1280 = arith.constant 1280 : index
    %c0_55 = arith.constant 0 : index
    %71 = vector.load %arg15[%c1280, %c0_55] : memref<3840x128xbf16, #tpu.memory_space<vmem>>, vector<256x128xbf16>
    %cst_56 = arith.constant dense<0.000000e+00> : vector<2x128xf32>
    %72 = tpu.matmul %70, %71, %cst_56 {dimension_numbers = #tpu.dot_dimension_numbers<[1], [0], [0], [1], [0, 0, 1, 1], [], []>} : vector<2x256xbf16>, vector<256x128xbf16>, vector<2x128xf32> -> vector<2x128xf32>
    %73 = arith.addf %69, %72 : vector<2x128xf32>
    %74 = vector.extract_strided_slice %44 {offsets = [12, 0], sizes = [2, 256], strides = [1, 1]} : vector<30x256xbf16> to vector<2x256xbf16>
    %c1536 = arith.constant 1536 : index
    %c0_57 = arith.constant 0 : index
    %75 = vector.load %arg15[%c1536, %c0_57] : memref<3840x128xbf16, #tpu.memory_space<vmem>>, vector<256x128xbf16>
    %cst_58 = arith.constant dense<0.000000e+00> : vector<2x128xf32>
    %76 = tpu.matmul %74, %75, %cst_58 {dimension_numbers = #tpu.dot_dimension_numbers<[1], [0], [0], [1], [0, 0, 1, 1], [], []>} : vector<2x256xbf16>, vector<256x128xbf16>, vector<2x128xf32> -> vector<2x128xf32>
    %77 = arith.addf %73, %76 : vector<2x128xf32>
    %78 = vector.extract_strided_slice %44 {offsets = [14, 0], sizes = [2, 256], strides = [1, 1]} : vector<30x256xbf16> to vector<2x256xbf16>
    %c1792 = arith.constant 1792 : index
    %c0_59 = arith.constant 0 : index
    %79 = vector.load %arg15[%c1792, %c0_59] : memref<3840x128xbf16, #tpu.memory_space<vmem>>, vector<256x128xbf16>
    %cst_60 = arith.constant dense<0.000000e+00> : vector<2x128xf32>
    %80 = tpu.matmul %78, %79, %cst_60 {dimension_numbers = #tpu.dot_dimension_numbers<[1], [0], [0], [1], [0, 0, 1, 1], [], []>} : vector<2x256xbf16>, vector<256x128xbf16>, vector<2x128xf32> -> vector<2x128xf32>
    %81 = arith.addf %77, %80 : vector<2x128xf32>
    %82 = vector.extract_strided_slice %44 {offsets = [16, 0], sizes = [2, 256], strides = [1, 1]} : vector<30x256xbf16> to vector<2x256xbf16>
    %c2048 = arith.constant 2048 : index
    %c0_61 = arith.constant 0 : index
    %83 = vector.load %arg15[%c2048, %c0_61] : memref<3840x128xbf16, #tpu.memory_space<vmem>>, vector<256x128xbf16>
    %cst_62 = arith.constant dense<0.000000e+00> : vector<2x128xf32>
    %84 = tpu.matmul %82, %83, %cst_62 {dimension_numbers = #tpu.dot_dimension_numbers<[1], [0], [0], [1], [0, 0, 1, 1], [], []>} : vector<2x256xbf16>, vector<256x128xbf16>, vector<2x128xf32> -> vector<2x128xf32>
    %85 = arith.addf %81, %84 : vector<2x128xf32>
    %86 = vector.extract_strided_slice %44 {offsets = [18, 0], sizes = [2, 256], strides = [1, 1]} : vector<30x256xbf16> to vector<2x256xbf16>
    %c2304 = arith.constant 2304 : index
    %c0_63 = arith.constant 0 : index
    %87 = vector.load %arg15[%c2304, %c0_63] : memref<3840x128xbf16, #tpu.memory_space<vmem>>, vector<256x128xbf16>
    %cst_64 = arith.constant dense<0.000000e+00> : vector<2x128xf32>
    %88 = tpu.matmul %86, %87, %cst_64 {dimension_numbers = #tpu.dot_dimension_numbers<[1], [0], [0], [1], [0, 0, 1, 1], [], []>} : vector<2x256xbf16>, vector<256x128xbf16>, vector<2x128xf32> -> vector<2x128xf32>
    %89 = arith.addf %85, %88 : vector<2x128xf32>
    %90 = vector.extract_strided_slice %44 {offsets = [20, 0], sizes = [2, 256], strides = [1, 1]} : vector<30x256xbf16> to vector<2x256xbf16>
    %c2560 = arith.constant 2560 : index
    %c0_65 = arith.constant 0 : index
    %91 = vector.load %arg15[%c2560, %c0_65] : memref<3840x128xbf16, #tpu.memory_space<vmem>>, vector<256x128xbf16>
    %cst_66 = arith.constant dense<0.000000e+00> : vector<2x128xf32>
    %92 = tpu.matmul %90, %91, %cst_66 {dimension_numbers = #tpu.dot_dimension_numbers<[1], [0], [0], [1], [0, 0, 1, 1], [], []>} : vector<2x256xbf16>, vector<256x128xbf16>, vector<2x128xf32> -> vector<2x128xf32>
    %93 = arith.addf %89, %92 : vector<2x128xf32>
    %94 = vector.extract_strided_slice %44 {offsets = [22, 0], sizes = [2, 256], strides = [1, 1]} : vector<30x256xbf16> to vector<2x256xbf16>
    %c2816 = arith.constant 2816 : index
    %c0_67 = arith.constant 0 : index
    %95 = vector.load %arg15[%c2816, %c0_67] : memref<3840x128xbf16, #tpu.memory_space<vmem>>, vector<256x128xbf16>
    %cst_68 = arith.constant dense<0.000000e+00> : vector<2x128xf32>
    %96 = tpu.matmul %94, %95, %cst_68 {dimension_numbers = #tpu.dot_dimension_numbers<[1], [0], [0], [1], [0, 0, 1, 1], [], []>} : vector<2x256xbf16>, vector<256x128xbf16>, vector<2x128xf32> -> vector<2x128xf32>
    %97 = arith.addf %93, %96 : vector<2x128xf32>
    %98 = vector.extract_strided_slice %44 {offsets = [24, 0], sizes = [2, 256], strides = [1, 1]} : vector<30x256xbf16> to vector<2x256xbf16>
    %c3072 = arith.constant 3072 : index
    %c0_69 = arith.constant 0 : index
    %99 = vector.load %arg15[%c3072, %c0_69] : memref<3840x128xbf16, #tpu.memory_space<vmem>>, vector<256x128xbf16>
    %cst_70 = arith.constant dense<0.000000e+00> : vector<2x128xf32>
    %100 = tpu.matmul %98, %99, %cst_70 {dimension_numbers = #tpu.dot_dimension_numbers<[1], [0], [0], [1], [0, 0, 1, 1], [], []>} : vector<2x256xbf16>, vector<256x128xbf16>, vector<2x128xf32> -> vector<2x128xf32>
    %101 = arith.addf %97, %100 : vector<2x128xf32>
    %102 = vector.extract_strided_slice %44 {offsets = [26, 0], sizes = [2, 256], strides = [1, 1]} : vector<30x256xbf16> to vector<2x256xbf16>
    %c3328 = arith.constant 3328 : index
    %c0_71 = arith.constant 0 : index
    %103 = vector.load %arg15[%c3328, %c0_71] : memref<3840x128xbf16, #tpu.memory_space<vmem>>, vector<256x128xbf16>
    %cst_72 = arith.constant dense<0.000000e+00> : vector<2x128xf32>
    %104 = tpu.matmul %102, %103, %cst_72 {dimension_numbers = #tpu.dot_dimension_numbers<[1], [0], [0], [1], [0, 0, 1, 1], [], []>} : vector<2x256xbf16>, vector<256x128xbf16>, vector<2x128xf32> -> vector<2x128xf32>
    %105 = arith.addf %101, %104 : vector<2x128xf32>
    %106 = vector.extract_strided_slice %44 {offsets = [28, 0], sizes = [2, 256], strides = [1, 1]} : vector<30x256xbf16> to vector<2x256xbf16>
    %c3584 = arith.constant 3584 : index
    %c0_73 = arith.constant 0 : index
    %107 = vector.load %arg15[%c3584, %c0_73] : memref<3840x128xbf16, #tpu.memory_space<vmem>>, vector<256x128xbf16>
    %cst_74 = arith.constant dense<0.000000e+00> : vector<2x128xf32>
    %108 = tpu.matmul %106, %107, %cst_74 {dimension_numbers = #tpu.dot_dimension_numbers<[1], [0], [0], [1], [0, 0, 1, 1], [], []>} : vector<2x256xbf16>, vector<256x128xbf16>, vector<2x128xf32> -> vector<2x128xf32>
    %109 = arith.addf %105, %108 : vector<2x128xf32>
    %c0_75 = arith.constant 0 : index
    %c0_76 = arith.constant 0 : index
    %110 = vector.load %arg6[%c0_75, %c0_76] : memref<1x128xf32, #tpu.memory_space<vmem>>, vector<1x128xf32>
    %111 = vector.broadcast %110 : vector<1x128xf32> to vector<2x128xf32>
    %112 = arith.addf %109, %111 : vector<2x128xf32>
    %cst_77 = arith.constant 0.000000e+00 : f32
    %113 = vector.broadcast %cst_77 : f32 to vector<2x128xf32>
    %114 = arith.maximumf %112, %113 : vector<2x128xf32>
    %115 = arith.truncf %114 : vector<2x128xf32> to vector<2x128xbf16>
    %c1_i32_78 = arith.constant 1 : i32
    %116 = tpu.memref_slice %arg17[%c1_i32_78] : memref<2x!tpu.dma_semaphore, #tpu.memory_space<semaphore_mem>> -> memref<1x!tpu.dma_semaphore, #tpu.memory_space<semaphore_mem>>
    %117 = tpu.memref_squeeze %116 : memref<1x!tpu.dma_semaphore, #tpu.memory_space<semaphore_mem>> -> memref<!tpu.dma_semaphore, #tpu.memory_space<semaphore_mem>>
    tpu.wait_dma2 semaphore(%117 : memref<!tpu.dma_semaphore, #tpu.memory_space<semaphore_mem>>) src(%arg12 : memref<3x128x128xbf16, #tpu.memory_space<any>>) dst(%arg16 : memref<3x128x128xbf16, #tpu.memory_space<vmem>>)
    %c0_79 = arith.constant 0 : index
    %c0_80 = arith.constant 0 : index
    %c0_81 = arith.constant 0 : index
    %118 = vector.load %arg16[%c0_79, %c0_80, %c0_81] : memref<3x128x128xbf16, #tpu.memory_space<vmem>>, vector<1x128x128xbf16>
    %119 = vector.shape_cast %118 : vector<1x128x128xbf16> to vector<128x128xbf16>
    %120 = arith.extf %119 : vector<128x128xbf16> to vector<128x128xf32>
    %c1_82 = arith.constant 1 : index
    %c0_83 = arith.constant 0 : index
    %c0_84 = arith.constant 0 : index
    %121 = vector.load %arg16[%c1_82, %c0_83, %c0_84] : memref<3x128x128xbf16, #tpu.memory_space<vmem>>, vector<1x128x128xbf16>
    %122 = vector.shape_cast %121 : vector<1x128x128xbf16> to vector<128x128xbf16>
    %123 = arith.extf %122 : vector<128x128xbf16> to vector<128x128xf32>
    %c2_85 = arith.constant 2 : index
    %c0_86 = arith.constant 0 : index
    %c0_87 = arith.constant 0 : index
    %124 = vector.load %arg16[%c2_85, %c0_86, %c0_87] : memref<3x128x128xbf16, #tpu.memory_space<vmem>>, vector<1x128x128xbf16>
    %125 = vector.shape_cast %124 : vector<1x128x128xbf16> to vector<128x128xbf16>
    %126 = arith.extf %125 : vector<128x128xbf16> to vector<128x128xf32>
    %127 = arith.mulf %123, %126 : vector<128x128xf32>
    %128 = arith.addf %120, %127 : vector<128x128xf32>
    %129 = arith.truncf %128 : vector<128x128xf32> to vector<128x128xbf16>
    %c0_88 = arith.constant 0 : index
    %c0_89 = arith.constant 0 : index
    %130 = vector.load %arg7[%c0_88, %c0_89] : memref<1x128xf32, #tpu.memory_space<vmem>>, vector<1x128xf32>
    %c0_90 = arith.constant 0 : index
    %c0_91 = arith.constant 0 : index
    %131 = vector.load %arg8[%c0_90, %c0_91] : memref<1x128xf32, #tpu.memory_space<vmem>>, vector<1x128xf32>
    %c0_92 = arith.constant 0 : index
    %c0_93 = arith.constant 0 : index
    %132 = vector.load %arg9[%c0_92, %c0_93] : memref<1x128xf32, #tpu.memory_space<vmem>>, vector<1x128xf32>
    %133 = arith.mulf %131, %132 : vector<1x128xf32>
    %134 = arith.addf %130, %133 : vector<1x128xf32>
    %cst_94 = arith.constant dense<0.000000e+00> : vector<2x128xf32>
    %135 = tpu.matmul %115, %129, %cst_94 {dimension_numbers = #tpu.dot_dimension_numbers<[1], [0], [0], [1], [0, 0, 1, 1], [], []>} : vector<2x128xbf16>, vector<128x128xbf16>, vector<2x128xf32> -> vector<2x128xf32>
    %136 = vector.broadcast %134 : vector<1x128xf32> to vector<2x128xf32>
    %137 = arith.addf %135, %136 : vector<2x128xf32>
    %c0_95 = arith.constant 0 : index
    %c0_96 = arith.constant 0 : index
    %138 = vector.load %arg13[%c0_95, %c0_96] : memref<2x128xf32, #tpu.memory_space<vmem>>, vector<2x128xf32>
    tpu.vector_store %arg13[%c0_95, %c0_96], %137 {strides = array<i32>} : memref<2x128xf32, #tpu.memory_space<vmem>>, vector<2x128xf32>,
    return
  }
}

</mosaic_0001>

<bundles_post_ra>
// kernel: dqn_noisy_forward.1
= control target key start
LH: loop header
LB: loop body
LE: loop exit
PB: predicated region body
PF: predicated region fallthrough
CT: control target
= control target key end

     0   :  { %18 = vsyncpa [#allocation7], 0  ;;  %s4892_s0 = inlined_call_operand.vmem [shape: bf16[32,64], index: 0, kind: input, shape index: {}]   ;;  %s4893_s1 = inlined_call_operand.vmem [shape: bf16[3,64,512], index: 1, kind: input, shape index: {}]   ;;  %s4894_s2 = inlined_call_operand.vmem [shape: f32[1,512], index: 2, kind: input, shape index: {}]   ;;  %s4895_s3 = inlined_call_operand.hbm [shape: bf16[2,512,256], index: 3, kind: input, shape index: {}]   ;;  %s4896_s4 = inlined_call_operand.vmem [shape: f32[1,256], index: 4, kind: input, shape index: {}]   ;;  %s4897_s5 = inlined_call_operand.vmem [shape: bf16[8,128], index: 5, kind: input, shape index: {}]   ;;  %s4898_s6 = inlined_call_operand.vmem [shape: f32[1,128], index: 6, kind: input, shape index: {}]   ;;  %s4899_s7 = inlined_call_operand.vmem [shape: f32[1,128], index: 7, kind: input, shape index: {}]   ;;  %s4900_s8 = inlined_call_operand.vmem [shape: f32[1,128], index: 8, kind: input, shape index: {}]   ;;  %s4901_s9 = inlined_call_operand.vmem [shape: f32[1,128], index: 9, kind: input, shape index: {}]   ;;  %s4902_s10 = inlined_call_operand.vmem [shape: bf16[2,8], index: 10, kind: input, shape index: {}]   ;;  %s4903_s11 = inlined_call_operand.hbm [shape: bf16[3840,128], index: 11, kind: input, shape index: {}]   ;;  %s4904_s12 = inlined_call_operand.vmem [shape: bf16[3,128,128], index: 12, kind: input, shape index: {}]   ;;  %s4905_s13 = inlined_call_operand.hbm [shape: f32[2,128], index: 13, kind: output, shape index: {}]  }
   0x1   :  { %19 = vsyncpa [#allocation8], 0  ;;  %s4243_s25 = smov [#allocation6]   ;;  %s4169_s29 = scalar_lea.hbm %s4895_s3, 16384 }
   0x2   :  { %s31_s26 = sshll.u32 %s4243_s25, 4  ;;  %p4170_p0 = scmp.ne.s32.totalorder %s4895_s3, %s4169_s29  ;;  %s32_s26 = int_to_ptr.vmem [resolvable:$true] %s31_s26 }
   0x3   :  { %p4173_p1 = scmp.lt.u32.totalorder %s4169_s29, %s4895_s3 }
   0x5   :  { %p4175_p2 = pnand %p4173_p1, %p4170_p0 }
   0x7   :  { %4178 = shalt.err (!%p4175_p2)
}
   0x8   :  { %s4179_s17 = scalar_lea.vmem %s32_s26, 16384  ;;  %p4184_p4 = scmp.lt.s32.totalorder %s32_s26, %s32_s26 }
   0x9   :  { %p4180_p3 = scmp.ne.s32.totalorder %s32_s26, %s4179_s17  ;;  %p4185_p5 = scmp.lt.s32.totalorder %s4179_s17, %s4179_s17 }
   0xb   :  { %p4186_p6 = por %p4185_p5, %p4184_p4 }
   0xd   :  { %p4187_p7 = pnand %p4186_p6, %p4180_p3 }
   0xf   :  { %4190 = shalt.err (!%p4187_p7)
}
  0x10   :  { %s4244_s18 = smov 128   ;;  %s4245_s19 = smov 8  }
  0x11   :  { %37 = dma.hbm_to_vmem [thread:$0]  %s4895_s3, 16384, %s32_s26, [#allocation7], %s4244_s18, %s4244_s18, %s4245_s19  }
  0x12   :  { %4235 = dma.done.wait [#allocation7], 16384  }
  0x13   :  { %4236 = vsyncadd [#allocation7], 4294950912  ;;  %s4246_s22 = smov [#allocation3]   ;;  %s4191_s27 = scalar_lea.hbm %s4903_s11, 30720 }
  0x14   :  { %s63_s23 = sshll.u32 %s4246_s22, 4  ;;  %p4192_p8 = scmp.ne.s32.totalorder %s4903_s11, %s4191_s27  ;;  %s64_s23 = int_to_ptr.vmem [resolvable:$true] %s63_s23 }
  0x15   :  { %p4195_p9 = scmp.lt.u32.totalorder %s4191_s27, %s4903_s11 }
  0x17   :  { %p4197_p10 = pnand %p4195_p9, %p4192_p8 }
  0x19   :  { %4200 = shalt.err (!%p4197_p10)  }
  0x1a   :  { %s4201_s3 = scalar_lea.vmem %s64_s23, 30720  ;;  %p4206_p12 = scmp.lt.s32.totalorder %s64_s23, %s64_s23 }
  0x1b   :  { %p4202_p11 = scmp.ne.s32.totalorder %s64_s23, %s4201_s3  ;;  %p4207_p13 = scmp.lt.s32.totalorder %s4201_s3, %s4201_s3 }
  0x1d   :  { %p4208_p0 = por %p4207_p13, %p4206_p12 }
  0x1f   :  { %p4209_p1 = pnand %p4208_p0, %p4202_p11 }
  0x21   :  { %4212 = shalt.err (!%p4209_p1)  }
  0x22   :  { %66 = dma.hbm_to_vmem [thread:$0]  %s4903_s11, 30720, %s64_s23, [#allocation5]  ;;  %v4348_v0 = vld [vmem:[%s4904_s12] sm:$0xff]  ;;  %v4353_v1 = vld [vmem:[%s4904_s12 + $0x8] sm:$0xff]  ;;  %v4358_v2 = vld [vmem:[%s4904_s12 + $0x10] sm:$0xff] }
  0x23   :  { %v4363_v3 = vld [vmem:[%s4904_s12 + $0x18] sm:$0xff]  ;;  %v4368_v4 = vld [vmem:[%s4904_s12 + $0x20] sm:$0xff]  ;;  %v4373_v5 = vld [vmem:[%s4904_s12 + $0x28] sm:$0xff] }
  0x24   :  { %v4378_v6 = vld [vmem:[%s4904_s12 + $0x30] sm:$0xff]  ;;  %v4383_v7 = vld [vmem:[%s4904_s12 + $0x38] sm:$0xff]  ;;  %v4388_v8 = vld [vmem:[%s4904_s12 + $0x40] sm:$0xff] }
  0x25   :  { %v4393_v9 = vld [vmem:[%s4904_s12 + $0x48] sm:$0xff]  ;;  %v4398_v10 = vld [vmem:[%s4904_s12 + $0x50] sm:$0xff]  ;;  %v4403_v11 = vld [vmem:[%s4904_s12 + $0x58] sm:$0xff] }
  0x26   :  { %v4408_v12 = vld [vmem:[%s4904_s12 + $0x60] sm:$0xff]  ;;  %v4413_v13 = vld [vmem:[%s4904_s12 + $0x68] sm:$0xff]  ;;  %v4418_v14 = vld [vmem:[%s4904_s12 + $0x70] sm:$0xff] }
  0x27   :  { %v4423_v15 = vld [vmem:[%s4904_s12 + $0x78] sm:$0xff]  ;;  %v4428_v16 = vld [vmem:[%s4904_s12 + $0x80] sm:$0xff]  ;;  %v4433_v17 = vld [vmem:[%s4904_s12 + $0x88] sm:$0xff] }
  0x28   :  { %v4438_v18 = vld [vmem:[%s4904_s12 + $0x90] sm:$0xff]  ;;  %v4443_v19 = vld [vmem:[%s4904_s12 + $0x98] sm:$0xff]  ;;  %v4448_v20 = vld [vmem:[%s4904_s12 + $0xa0] sm:$0xff] }
  0x29   :  { %v4453_v21 = vld [vmem:[%s4904_s12 + $0xa8] sm:$0xff]  ;;  %v4458_v22 = vld [vmem:[%s4904_s12 + $0xb0] sm:$0xff]  ;;  %v4463_v23 = vld [vmem:[%s4904_s12 + $0xb8] sm:$0xff] }
  0x2a   :  { %155 = vsyncadd [#allocation5 + $0x1], 3072  ;;  %v3899_v24 = vld [vmem:[%s4893_s1 + $0x84] ss:$16 sps:$4 sm:$0xff]   ;;  %v3901_v25 = vld [vmem:[%s4893_s1 + $0x80] ss:$16 sps:$4 sm:$0xff]  }
  0x2b   :  { %v4247_v26 = vmov 0   ;;  %v3902_v27 = vld [vmem:[%s4893_s1 + $0xa4] ss:$16 sps:$4 sm:$0xff]   ;;  %296 = vmatprep.subr.bf16.mxu0 %v3899_v24  ;;  %v3904_v28 = vld [vmem:[%s4893_s1 + $0xa0] ss:$16 sps:$4 sm:$0xff]   ;;  %vm205_vm0 = vcmask 1046528  }
  0x2c   :  { %328 = vmatprep.mubr.bf16.mxu0 %v4247_v26  ;;  %381 = vmatprep.mubr.bf16.mxu1 %v4247_v26  ;;  %v3905_v29 = vld [vmem:[%s4893_s1 + $0xc4] ss:$16 sps:$4 sm:$0xff]   ;;  %v4490_v31 = vld [vmem:[%s4892_s0 + $0x8] sm:$0xf]  ;;  %v176_v32 = vld [vmem:[%s4892_s0] sm:$0xe] }
  0x2d   :  { %297 = vmatpush1.bf16.msra.mxu0 %v3901_v25  ;;  %v4485_v30 = vld [vmem:[%s4892_s0 + $0x4] sm:$0xf]  ;;  %v177_v33 = vld [vmem:[%s4892_s0 + $0xc] sm:$0x7]  ;;  %v3907_v34 = vld [vmem:[%s4893_s1 + $0xc0] ss:$16 sps:$4 sm:$0xff]  }
  0x2e   :  { %298 = vmatprep.subr.bf16.mxu0 %v3902_v27  ;;  %v3254_v35 = vcombine.low %v176_v32, %v4485_v30  ;;  %v3255_v36 = vcombine.low %v4490_v31, %v177_v33  ;;  %v3908_v37 = vld [vmem:[%s4893_s1 + $0xe4] ss:$16 sps:$4 sm:$0xff]   ;;  %v3922_v38 = vld [vmem:[%s4893_s1 + $0x8c] ss:$16 sps:$4 sm:$0xff]   ;;  %v3924_v39 = vld [vmem:[%s4893_s1 + $0x88] ss:$16 sps:$4 sm:$0xff]  }
  0x2f   :  { %v3910_v40 = vld [vmem:[%s4893_s1 + $0xe0] ss:$16 sps:$4 sm:$0xff]   ;;  %v3918_v43 = vld [vmem:[%s4893_s1 + $0x4] ss:$16 sps:$4 sm:$0xff]   ;;  %349 = vmatprep.subr.bf16.mxu1 %v3922_v38  ;;  %v3928_v44 = vld [vmem:[%s4893_s1 + $0xac] ss:$16 sps:$4 sm:$0xff]  }
  0x30   :  { %v206_v41 = vrot.slane %v3254_v35, 1  ;;  %v4515_v42 = vrot.slane %v3255_v36, 1  ;;  %350 = vmatpush1.bf16.msra.mxu1 %v3924_v39  ;;  %v3930_v45 = vld [vmem:[%s4893_s1 + $0xa8] ss:$16 sps:$4 sm:$0xff]   ;;  %v3916_v46 = vld [vmem:[%s4893_s1] ss:$16 sps:$4 sm:$0xff]  }
  0x31   :  { %299 = vmatpush1.bf16.msra.mxu0 %v3904_v28  ;;  %vm289_vm1 = vcmask 523264   ;;  %351 = vmatprep.subr.bf16.mxu1 %v3928_v44  ;;  %v3934_v48 = vld [vmem:[%s4893_s1 + $0xcc] ss:$16 sps:$4 sm:$0xff]   ;;  %v3921_v49 = vld [vmem:[%s4893_s1 + $0x24] ss:$16 sps:$4 sm:$0xff]   ;;  %vm625_vm2 = vcmask 1045504  }
  0x32   :  { %300 = vmatprep.subr.bf16.mxu0 %v3905_v29  ;;  %v208_v47 = vsel %vm205_vm0, %v206_v41, %v4515_v42  ;;  %v3936_v50 = vld [vmem:[%s4893_s1 + $0xc8] ss:$16 sps:$4 sm:$0xff]   ;;  %v3940_v51 = vld [vmem:[%s4893_s1 + $0xec] ss:$16 sps:$4 sm:$0xff]   ;;  %v3919_v52 = vld [vmem:[%s4893_s1 + $0x20] ss:$16 sps:$4 sm:$0xff]  }
  0x33   :  { %v3927_v53 = vld [vmem:[%s4893_s1 + $0x44] ss:$16 sps:$4 sm:$0xff]   ;;  %v3942_v54 = vld [vmem:[%s4893_s1 + $0xe8] ss:$16 sps:$4 sm:$0xff]   ;;  %v3948_v55 = vld [vmem:[%s4893_s1 + $0xc] ss:$16 sps:$4 sm:$0xff]  }
  0x34   :  { %352 = vmatpush1.bf16.msra.mxu1 %v3930_v45  ;;  %v3925_v56 = vld [vmem:[%s4893_s1 + $0x40] ss:$16 sps:$4 sm:$0xff]   ;;  %v3933_v57 = vld [vmem:[%s4893_s1 + $0x64] ss:$16 sps:$4 sm:$0xff]   ;;  %v3946_v59 = vld [vmem:[%s4893_s1 + $0x8] ss:$16 sps:$4 sm:$0xff]  }
  0x35   :  { %301 = vmatpush1.bf16.msra.mxu0 %v3907_v34  ;;  %353 = vmatprep.subr.bf16.mxu1 %v3934_v48  ;;  %v156_v58 = vld [vmem:[%s4892_s0] sm:$0xf]  ;;  %v3955_v60 = vld [vmem:[%s4893_s1 + $0x2c] ss:$16 sps:$4 sm:$0xff]   ;;  %v3939_v62 = vld [vmem:[%s4893_s1 + $0x104] ss:$16 sps:$4 sm:$0xff]  }
  0x36   :  { %302 = vmatprep.subr.bf16.mxu0 %v3908_v37  ;;  %v3931_v61 = vld [vmem:[%s4893_s1 + $0x60] ss:$16 sps:$4 sm:$0xff]   ;;  %v3953_v63 = vld [vmem:[%s4893_s1 + $0x28] ss:$16 sps:$4 sm:$0xff]   ;;  %v3276_v24 = vcombine.low %v156_v58, %v4485_v30  ;;  %v3961_v25 = vld [vmem:[%s4893_s1 + $0x4c] ss:$16 sps:$4 sm:$0xff]  }
  0x37   :  { %v3937_v27 = vld [vmem:[%s4893_s1 + $0x100] ss:$16 sps:$4 sm:$0xff]   ;;  %v3945_v28 = vld [vmem:[%s4893_s1 + $0x124] ss:$16 sps:$4 sm:$0xff]   ;;  %v3959_v32 = vld [vmem:[%s4893_s1 + $0x48] ss:$16 sps:$4 sm:$0xff]  }
  0x38   :  { %354 = vmatpush1.bf16.msra.mxu1 %v3936_v50  ;;  %v3943_v29 = vld [vmem:[%s4893_s1 + $0x120] ss:$16 sps:$4 sm:$0xff]   ;;  %v3964_v34 = vld [vmem:[%s4893_s1 + $0x6c] ss:$16 sps:$4 sm:$0xff]   ;;  %v3952_v37 = vld [vmem:[%s4893_s1 + $0x144] ss:$16 sps:$4 sm:$0xff]  }
  0x39   :  { %303 = vmatpush1.bf16.msra.mxu0 %v3910_v40  ;;  %355 = vmatprep.subr.bf16.mxu1 %v3940_v51  ;;  %v600_v33 = vld [vmem:[%s4892_s0] sm:$0xc]  ;;  %v159_v35 = vld [vmem:[%s4892_s0 + $0xc] sm:$0x3]  ;;  %v3962_v38 = vld [vmem:[%s4893_s1 + $0x68] ss:$16 sps:$4 sm:$0xff]  }
  0x3a   :  { %494 = vmatprep.subr.bf16.mxu0 %v3918_v43  ;;  %v601_v36 = vld [vmem:[%s4892_s0 + $0xc] sm:$0xf]  ;;  %v3277_v39 = vcombine.low %v4490_v31, %v159_v35  ;;  %v3314_v41 = vcombine.low %v600_v33, %v4485_v30  ;;  %v3958_v44 = vld [vmem:[%s4893_s1 + $0x164] ss:$16 sps:$4 sm:$0xff]   ;;  %v3956_v45 = vld [vmem:[%s4893_s1 + $0x160] ss:$16 sps:$4 sm:$0xff]  }
  0x3b   :  { %v3967_v40 = vld [vmem:[%s4893_s1 + $0x10c] ss:$16 sps:$4 sm:$0xff]   ;;  %v3315_v43 = vcombine.low %v4490_v31, %v601_v36  ;;  %v3965_v30 = vld [vmem:[%s4893_s1 + $0x108] ss:$16 sps:$4 sm:$0xff]   ;;  %vm915_vm3 = vcmask 1041408  }
  0x3c   :  { %3272 = vmatmul.mubr.msk.bf16.vlgmr.msra.gmra.mrb[0].mxu0 %vm289_vm1, %v208_v47  ;;  %356 = vmatpush1.bf16.msra.mxu1 %v3942_v54  ;;  %v3970_v31 = vld [vmem:[%s4893_s1 + $0x12c] ss:$16 sps:$4 sm:$0xff]   ;;  %v3968_v48 = vld [vmem:[%s4893_s1 + $0x128] ss:$16 sps:$4 sm:$0xff]  }
  0x3d   :  { %495 = vmatpush1.bf16.msra.mxu0 %v3916_v46  ;;  %338 = vmatprep.mubr.bf16.mxu0 %v4247_v26  ;;  %v626_v46 = vrot.slane %v3314_v41, 2  ;;  %v3979_v50 = vld [vmem:[#allocation6 + $0x204] ss:$8 sps:$4 sm:$0xff]   ;;  %v3977_v51 = vld [vmem:[#allocation6 + $0x200] ss:$8 sps:$4 sm:$0xff]  }
  0x3e   :  { %496 = vmatprep.subr.bf16.mxu0 %v3921_v49  ;;  %547 = vmatprep.subr.bf16.mxu1 %v3948_v55  ;;  %v3973_v49 = vld [vmem:[%s4893_s1 + $0x14c] ss:$16 sps:$4 sm:$0xff]   ;;  %v3971_v54 = vld [vmem:[%s4893_s1 + $0x148] ss:$16 sps:$4 sm:$0xff]  }
  0x3f   :  { %3274 = vmatmul.mubr.msk.bf16.vlgmr.msra.gmra.mrb[0].mxu1 %vm289_vm1, %v208_v47  ;;  %v627_v47 = vrot.slane %v3315_v43, 2  ;;  %v3976_v55 = vld [vmem:[%s4893_s1 + $0x16c] ss:$16 sps:$4 sm:$0xff]   ;;  %v3974_v58 = vld [vmem:[%s4893_s1 + $0x168] ss:$16 sps:$4 sm:$0xff]  }
  0x40   :  { %548 = vmatpush1.bf16.msra.mxu1 %v3946_v59  ;;  %391 = vmatprep.mubr.bf16.mxu1 %v4247_v26  ;;  %v3983_v59 = vld [vmem:[#allocation6 + $0x220] ss:$8 sps:$4 sm:$0xff]   ;;  %v4003_v33 = vld [vmem:[#allocation6 + $0x284] ss:$8 sps:$4 sm:$0xff]   ;;  %v4004_v35 = vld [vmem:[#allocation6 + $0x290] ss:$8 sps:$4 sm:$0xff]  }
  0x41   :  { %497 = vmatpush1.bf16.msra.mxu0 %v3919_v52  ;;  %549 = vmatprep.subr.bf16.mxu1 %v3955_v60  ;;  %v3982_v52 = vld [vmem:[#allocation6 + $0x214] ss:$8 sps:$4 sm:$0xff]   ;;  %v4009_v36 = vld [vmem:[#allocation6 + $0x2a4] ss:$8 sps:$4 sm:$0xff]   ;;  %v4013_v43 = vld [vmem:[#allocation6 + $0x2c0] ss:$8 sps:$4 sm:$0xff]  }
  0x42   :  { %498 = vmatprep.subr.bf16.mxu0 %v3927_v53  ;;  %v628_v53 = vsel %vm625_vm2, %v626_v46, %v627_v47  ;;  %v3988_v60 = vld [vmem:[#allocation6 + $0x234] ss:$8 sps:$4 sm:$0xff]   ;;  %v4015_v41 = vld [vmem:[#allocation6 + $0x2c4] ss:$8 sps:$4 sm:$0xff]   ;;  %v4022_v46 = vld [vmem:[#allocation6 + $0x2f0] ss:$8 sps:$4 sm:$0xff]  }
  0x44   :  { %3273 = vmatmul.mubr.msk.bf16.gmra.mrb[4].mxu0 %vm289_vm1, %v4515_v42  ;;  %550 = vmatpush1.bf16.msra.mxu1 %v3953_v63  ;;  %v3989_v63 = vld [vmem:[#allocation6 + $0x240] ss:$8 sps:$4 sm:$0xff]  }
  0x45   :  { %499 = vmatpush1.bf16.msra.mxu0 %v3925_v56  ;;  %526 = vmatprep.mubr.bf16.mxu0 %v4247_v26  ;;  %v3980_v56 = vld [vmem:[#allocation6 + $0x210] ss:$8 sps:$4 sm:$0xff]  }
  0x46   :  { %500 = vmatprep.subr.bf16.mxu0 %v3933_v57  ;;  %551 = vmatprep.subr.bf16.mxu1 %v3961_v25  ;;  %v3985_v57 = vld [vmem:[#allocation6 + $0x224] ss:$8 sps:$4 sm:$0xff]   ;;  %v3992_v25 = vld [vmem:[#allocation6 + $0x250] ss:$8 sps:$4 sm:$0xff]  }
  0x47   :  { %3275 = vmatmul.mubr.msk.bf16.gmra.mrb[4].mxu1 %vm289_vm1, %v4515_v42  ;;  %v3950_v42 = vld [vmem:[%s4893_s1 + $0x140] ss:$16 sps:$4 sm:$0xff]  }
  0x48   :  { %552 = vmatpush1.bf16.msra.mxu1 %v3959_v32  ;;  %579 = vmatprep.mubr.bf16.mxu1 %v4247_v26  ;;  %v3998_v32 = vld [vmem:[#allocation6 + $0x270] ss:$8 sps:$4 sm:$0xff]  }
  0x49   :  { %501 = vmatpush1.bf16.msra.mxu0 %v3931_v61  ;;  %553 = vmatprep.subr.bf16.mxu1 %v3964_v34  ;;  %v3986_v61 = vld [vmem:[#allocation6 + $0x230] ss:$8 sps:$4 sm:$0xff]   ;;  %v4006_v34 = vld [vmem:[#allocation6 + $0x294] ss:$8 sps:$4 sm:$0xff]  }
  0x4a   :  { %715 = vmatprep.subr.bf16.mxu0 %v3939_v62  ;;  %v3991_v62 = vld [vmem:[#allocation6 + $0x244] ss:$8 sps:$4 sm:$0xff]  }
  0x4c   :  { %3294 = vmatmul.mubr.msk.bf16.vlgmr.msra.gmra.mrb[0].mxu0 %vm289_vm1, %v3276_v24  ;;  %554 = vmatpush1.bf16.msra.mxu1 %v3962_v38  ;;  %v4248_v38 = vmov 0.0  }
  0x4d   :  { %716 = vmatpush1.bf16.msra.mxu0 %v3937_v27  ;;  %536 = vmatprep.mubr.bf16.mxu0 %v4247_v26  ;;  %v3997_v27 = vld [vmem:[#allocation6 + $0x264] ss:$8 sps:$4 sm:$0xff]   ;;  %896 = vst [vmem:[#allocation2 + $0x68] sm:$0xc0] %v4248_v38  ;;  %891 = vst [vmem:[#allocation2] sm:$0x3] %v4248_v38 }
  0x4e   :  { %717 = vmatprep.subr.bf16.mxu0 %v3945_v28  ;;  %768 = vmatprep.subr.bf16.mxu1 %v3967_v40  ;;  %v3995_v28 = vld [vmem:[#allocation6 + $0x260] ss:$8 sps:$4 sm:$0xff]   ;;  %892 = vst [vmem:[#allocation2 + $0x8] sm:$0x3] %v4248_v38  ;;  %893 = vst [vmem:[#allocation2 + $0x10] sm:$0x3] %v4248_v38 }
  0x4f   :  { %3296 = vmatmul.mubr.msk.bf16.vlgmr.msra.gmra.mrb[0].mxu1 %vm289_vm1, %v3276_v24  ;;  %v3994_v24 = vld [vmem:[#allocation6 + $0x254] ss:$8 sps:$4 sm:$0xff]   ;;  %894 = vst [vmem:[#allocation2 + $0x18] sm:$0x3] %v4248_v38  ;;  %895 = vst [vmem:[#allocation2 + $0x60] sm:$0xc0] %v4248_v38 }
  0x50   :  { %769 = vmatpush1.bf16.msra.mxu1 %v3965_v30  ;;  %589 = vmatprep.mubr.bf16.mxu1 %v4247_v26  ;;  %897 = vst [vmem:[#allocation2 + $0x70] sm:$0xc0] %v4248_v38  ;;  %898 = vst [vmem:[#allocation2 + $0x78] sm:$0xc0] %v4248_v38  ;;  %v4010_v40 = vld [vmem:[#allocation6 + $0x2b0] ss:$8 sps:$4 sm:$0xff]  }
  0x51   :  { %718 = vmatpush1.bf16.msra.mxu0 %v3943_v29  ;;  %770 = vmatprep.subr.bf16.mxu1 %v3970_v31  ;;  %v4000_v29 = vld [vmem:[#allocation6 + $0x274] ss:$8 sps:$4 sm:$0xff]   ;;  %v4019_v30 = vld [vmem:[#allocation6 + $0x2e0] ss:$8 sps:$4 sm:$0xff]  }
  0x52   :  { %719 = vmatprep.subr.bf16.mxu0 %v3952_v37  ;;  %v4007_v37 = vld [vmem:[#allocation6 + $0x2a0] ss:$8 sps:$4 sm:$0xff]   ;;  %v4024_v31 = vld [vmem:[#allocation6 + $0x2f4] ss:$8 sps:$4 sm:$0xff]  }
  0x54   :  { %3295 = vmatmul.mubr.msk.bf16.gmra.mrb[4].mxu0 %vm289_vm1, %v3277_v39  ;;  %771 = vmatpush1.bf16.msra.mxu1 %v3968_v48  ;;  %v839_v48 = vlaneseq }
  0x55   :  { %720 = vmatpush1.bf16.msra.mxu0 %v3950_v42  ;;  %747 = vmatprep.mubr.bf16.mxu0 %v4247_v26  ;;  %v4018_v42 = vld [vmem:[#allocation6 + $0x2d4] ss:$8 sps:$4 sm:$0xff]  }
  0x56   :  { %721 = vmatprep.subr.bf16.mxu0 %v3958_v44  ;;  %772 = vmatprep.subr.bf16.mxu1 %v3973_v49  ;;  %v4016_v44 = vld [vmem:[#allocation6 + $0x2d0] ss:$8 sps:$4 sm:$0xff]   ;;  %v4681_v49 = vshrl.u32 %v839_v48, 7 }
  0x57   :  { %3297 = vmatmul.mubr.msk.bf16.gmra.mrb[4].mxu1 %vm289_vm1, %v3277_v39  ;;  %v4012_v39 = vld [vmem:[#allocation6 + $0x2b4] ss:$8 sps:$4 sm:$0xff]  }
  0x58   :  { %773 = vmatpush1.bf16.msra.mxu1 %v3971_v54  ;;  %800 = vmatprep.mubr.bf16.mxu1 %v4247_v26 }
  0x59   :  { %722 = vmatpush1.bf16.msra.mxu0 %v3956_v45  ;;  %774 = vmatprep.subr.bf16.mxu1 %v3976_v55  ;;  %v4021_v45 = vld [vmem:[#allocation6 + $0x2e4] ss:$8 sps:$4 sm:$0xff]  }
  0x5a   :  { %1493 = vmatprep.subr.bf16.mxu0 %v3979_v50  ;;  %v4684_v50 = vsub.s32 0, %v4681_v49 }
  0x5c   :  { %3332 = vmatmul.mubr.msk.bf16.vlgmr.msra.gmra.mrb[0].mxu0 %vm289_vm1, %v628_v53  ;;  %775 = vmatpush1.bf16.msra.mxu1 %v3974_v58 }
  0x5d   :  { %757 = vmatprep.mubr.bf16.mxu0 %v4247_v26  ;;  %1494 = vmatpush1.bf16.msra.mxu0 %v3977_v51  ;;  %v837_v51 = vld [vmem:[%s4894_s2] sm:$0xf] }
  0x5e   :  { %1495 = vmatprep.subr.bf16.mxu0 %v3982_v52  ;;  %v845_v52 = vsub.s32 1, %v4681_v49 }
  0x5f   :  { %3334 = vmatmul.mubr.msk.bf16.vlgmr.msra.gmra.mrb[0].mxu1 %vm289_vm1, %v628_v53  ;;  %v842_v53 = vrot.slane %v837_v51, %v4684_v50 }
  0x60   :  { %810 = vmatprep.mubr.bf16.mxu1 %v4247_v26  ;;  %v4001_v26 = vld [vmem:[#allocation6 + $0x280] ss:$8 sps:$4 sm:$0xff]   ;;  %v846_v54 = vrot.slane %v837_v51, %v845_v52 }
  0x61   :  { %1496 = vmatpush1.bf16.msra.mxu0 %v3980_v56 }
  0x62   :  { %1497 = vmatprep.subr.bf16.mxu0 %v3985_v57 }
  0x64   :  { %3333 = vmatmul.mubr.msk.bf16.gmra.mrb[4].mxu0 %vm289_vm1, %v627_v47 }
  0x65   :  { %1498 = vmatpush1.bf16.msra.mxu0 %v3983_v59 }
  0x66   :  { %1499 = vmatprep.subr.bf16.mxu0 %v3988_v60 }
  0x67   :  { %3335 = vmatmul.mubr.msk.bf16.gmra.mrb[4].mxu1 %vm289_vm1, %v627_v47  ;;  %v4027_v47 = vld [vmem:[#allocation6 + $0x304] ss:$8 sps:$4 sm:$0xff]  }
  0x69   :  { %1500 = vmatpush1.bf16.msra.mxu0 %v3986_v61 }
  0x6a   :  { %1501 = vmatprep.subr.bf16.mxu0 %v3991_v62 }
  0x6d   :  { %1502 = vmatpush1.bf16.msra.mxu0 %v3989_v63  ;;  %v849_v63 = vsub.s32 2, %v4681_v49 }
  0x6e   :  { %1503 = vmatprep.subr.bf16.mxu0 %v3994_v24 }
  0x71   :  { %1504 = vmatpush1.bf16.msra.mxu0 %v3992_v25 }
  0x72   :  { %1505 = vmatprep.subr.bf16.mxu0 %v3997_v27  ;;  %v853_v27 = vsub.s32 3, %v4681_v49 }
  0x75   :  { %1506 = vmatpush1.bf16.msra.mxu0 %v3995_v28 }
  0x76   :  { %1507 = vmatprep.subr.bf16.mxu0 %v4000_v29 }
  0x79   :  { %1508 = vmatpush1.bf16.msra.mxu0 %v3998_v32 }
  0x7a   :  { %1509 = vmatprep.subr.bf16.mxu0 %v4003_v33 }
  0x7d   :  { %1510 = vmatpush1.bf16.msra.mxu0 %v4001_v26 }
  0x7e   :  { %1511 = vmatprep.subr.bf16.mxu0 %v4006_v34  ;;  %v850_v34 = vrot.slane %v837_v51, %v849_v63 }
  0x81   :  { %1512 = vmatpush1.bf16.msra.mxu0 %v4004_v35 }
  0x82   :  { %1513 = vmatprep.subr.bf16.mxu0 %v4009_v36 }
  0x85   :  { %1514 = vmatpush1.bf16.msra.mxu0 %v4007_v37  ;;  %v854_v37 = vrot.slane %v837_v51, %v853_v27 }
  0x86   :  { %1515 = vmatprep.subr.bf16.mxu0 %v4012_v39 }
  0x89   :  { %1516 = vmatpush1.bf16.msra.mxu0 %v4010_v40 }
  0x8a   :  { %1517 = vmatprep.subr.bf16.mxu0 %v4015_v41 }
  0x8d   :  { %1518 = vmatpush1.bf16.msra.mxu0 %v4013_v43 }
  0x8e   :  { %1519 = vmatprep.subr.bf16.mxu0 %v4018_v42 }
  0x91   :  { %1520 = vmatpush1.bf16.msra.mxu0 %v4016_v44 }
  0x92   :  { %1521 = vmatprep.subr.bf16.mxu0 %v4021_v45 }
  0x95   :  { %1522 = vmatpush1.bf16.msra.mxu0 %v4019_v30 }
  0x96   :  { %1523 = vmatprep.subr.bf16.mxu0 %v4024_v31 }
  0x99   :  { %1524 = vmatpush1.bf16.msra.mxu0 %v4022_v46 }
  0x9a   :  { %1546 = vmatprep.subr.bf16.mxu0 %v4027_v47 }
 0x12f   :  { %v749_v55 = vpop.f32.mrb[0].mxu0 }
 0x130   :  { %v859_v56 = vadd.f32 %v842_v53, %v749_v55  ;;  %v751_v57 = vpop.f32.mrb[1].mxu0 }
 0x131   :  { %v860_v58 = vadd.f32 %v846_v54, %v751_v57  ;;  %v753_v59 = vpop.f32.mrb[2].mxu0 }
 0x132   :  { %v875_v60 = vmax.f32 %v859_v56, 0.0  ;;  %v863_v61 = vadd.f32 %v842_v53, %v753_v59  ;;  %v755_v62 = vpop.f32.mrb[3].mxu0  ;;  %v802_v45 = vpop.f32.mrb[0].mxu1 }
 0x133   :  { %v876_v24 = vmax.f32 %v860_v58, 0.0  ;;  %v864_v25 = vadd.f32 %v846_v54, %v755_v62  ;;  %v861_v47 = vadd.f32 %v850_v34, %v802_v45  ;;  %v804_v48 = vpop.f32.mrb[1].mxu1 }
 0x134   :  { %v916_v28 = vrot.slane %v875_v60, 6  ;;  %v879_v29 = vmax.f32 %v863_v61, 0.0  ;;  %v862_v57 = vadd.f32 %v854_v37, %v804_v48  ;;  %v806_v51 = vpop.f32.mrb[2].mxu1 }
 0x135   :  { %v917_v32 = vrot.slane %v876_v24, 6  ;;  %v880_v33 = vmax.f32 %v864_v25, 0.0  ;;  %v877_v60 = vmax.f32 %v861_v47, 0.0  ;;  %v865_v61 = vadd.f32 %v850_v34, %v806_v51  ;;  %v808_v62 = vpop.f32.mrb[3].mxu1 }
 0x136   :  { %960 = vst [vmem:[#allocation2] sm:$0xfc] %v916_v28  ;;  %v920_v26 = vrot.slane %v879_v29, 6  ;;  %v878_v25 = vmax.f32 %v862_v57, 0.0  ;;  %v866_v27 = vadd.f32 %v854_v37, %v808_v62 }
 0x137   :  { %961 = vst [vmem:[#allocation2 + $0x8] sm:$0xfc] %v917_v32  ;;  %v922_v35 = vrot.slane %v880_v33, 6  ;;  %v759_v36 = vpop.f32.mrb[4].mxu0  ;;  %v918_v29 = vrot.slane %v877_v60, 6 }
 0x138   :  { %v4696_v39 = vsel %vm915_vm3, %v916_v28, %v920_v26  ;;  %v867_v40 = vadd.f32 %v842_v53, %v759_v36  ;;  %v761_v41 = vpop.f32.mrb[5].mxu0  ;;  %v919_v36 = vrot.slane %v878_v25, 6 }
 0x139   :  { %v4699_v43 = vsel %vm915_vm3, %v917_v32, %v922_v35  ;;  %v868_v42 = vadd.f32 %v846_v54, %v761_v41  ;;  %v763_v44 = vpop.f32.mrb[6].mxu0  ;;  %v881_v32 = vmax.f32 %v865_v61, 0.0  ;;  %962 = vst [vmem:[#allocation2 + $0x10] sm:$0xfc] %v918_v29 }
 0x13a   :  { %v883_v30 = vmax.f32 %v867_v40, 0.0  ;;  %v871_v31 = vadd.f32 %v842_v53, %v763_v44  ;;  %v765_v46 = vpop.f32.mrb[7].mxu0  ;;  %v882_v40 = vmax.f32 %v866_v27, 0.0  ;;  %963 = vst [vmem:[#allocation2 + $0x18] sm:$0xfc] %v919_v36 }
 0x13b   :  { %v884_v55 = vmax.f32 %v868_v42, 0.0  ;;  %v872_v56 = vadd.f32 %v846_v54, %v765_v46  ;;  %v924_v42 = vrot.slane %v881_v32, 6 }
 0x13c   :  { %v928_v58 = vrot.slane %v883_v30, 6  ;;  %v887_v59 = vmax.f32 %v871_v31, 0.0  ;;  %v926_v45 = vrot.slane %v882_v40, 6 }
 0x13d   :  { %v930_v63 = vrot.slane %v884_v55, 6  ;;  %v888_v24 = vmax.f32 %v872_v56, 0.0  ;;  %v4710_v30 = vsel %vm915_vm3, %v918_v29, %v924_v42  ;;  %v1064_v51 = vld [vmem:[#allocation2] sm:$0xfc] }
 0x13e   :  { %v4702_v28 = vsel %vm915_vm3, %v920_v26, %v928_v58  ;;  %v936_v53 = vrot.slane %v887_v59, 6  ;;  %v812_v26 = vpop.f32.mrb[4].mxu1  ;;  %v4713_v46 = vsel %vm915_vm3, %v919_v36, %v926_v45  ;;  %v1065_v60 = vld [vmem:[#allocation2 + $0x8] sm:$0xfc]  ;;  %v1072_v25 = vpack.c.bf16 %v4696_v39, %v1064_v51 }
 0x13f   :  { %v4705_v33 = vsel %vm915_vm3, %v922_v35, %v930_v63  ;;  %v938_v54 = vrot.slane %v888_v24, 6  ;;  %v869_v31 = vadd.f32 %v850_v34, %v812_v26  ;;  %v814_v35 = vpop.f32.mrb[5].mxu1  ;;  %v1073_v29 = vpack.c.bf16 %v4699_v43, %v1065_v60  ;;  %v4033_v60 = vld [vmem:[#allocation6 + $0x324] ss:$8 sps:$4 sm:$0xff]  }
 0x140   :  { %v937_v41 = vsel %vm915_vm3, %v928_v58, %v936_v53  ;;  %v870_v47 = vadd.f32 %v854_v37, %v814_v35  ;;  %v816_v48 = vpop.f32.mrb[6].mxu1 }
 0x141   :  { %972 = vst [vmem:[#allocation2 + $0x60] sm:$0x3f] %v937_v41  ;;  %v939_v44 = vsel %vm915_vm3, %v930_v63, %v938_v54  ;;  %v885_v55 = vmax.f32 %v869_v31, 0.0  ;;  %v873_v56 = vadd.f32 %v850_v34, %v816_v48  ;;  %v818_v57 = vpop.f32.mrb[7].mxu1  ;;  %v1156_v31 = vrot.slane %v1073_v29, 1 }
 0x142   :  { %973 = vst [vmem:[#allocation2 + $0x68] sm:$0x3f] %v939_v44  ;;  %v886_v58 = vmax.f32 %v870_v47, 0.0  ;;  %v874_v59 = vadd.f32 %v854_v37, %v818_v57  ;;  %v1066_v47 = vld [vmem:[#allocation2 + $0x10] sm:$0xfc] }
 0x143   :  { %v932_v61 = vrot.slane %v885_v55, 6  ;;  %v889_v62 = vmax.f32 %v873_v56, 0.0  ;;  %v4025_v48 = vld [vmem:[#allocation6 + $0x300] ss:$8 sps:$4 sm:$0xff]   ;;  %v1067_v55 = vld [vmem:[#allocation2 + $0x18] sm:$0xfc]  ;;  %v1074_v51 = vpack.c.bf16 %v4710_v30, %v1066_v47 }
 0x144   :  { %v934_v63 = vrot.slane %v886_v58, 6  ;;  %v890_v24 = vmax.f32 %v874_v59, 0.0  ;;  %v4030_v57 = vld [vmem:[#allocation6 + $0x314] ss:$8 sps:$4 sm:$0xff]   ;;  %v1075_v58 = vpack.c.bf16 %v4713_v46, %v1067_v55  ;;  %v4028_v59 = vld [vmem:[#allocation6 + $0x310] ss:$8 sps:$4 sm:$0xff]  }
 0x145   :  { %v4717_v27 = vsel %vm915_vm3, %v924_v42, %v932_v61  ;;  %v940_v53 = vrot.slane %v889_v62, 6  ;;  %v1153_v42 = vrot.slane %v1072_v25, 1  ;;  %v4031_v29 = vld [vmem:[#allocation6 + $0x320] ss:$8 sps:$4 sm:$0xff]   ;;  %v4045_v47 = vld [vmem:[#allocation6 + $0x364] ss:$8 sps:$4 sm:$0xff]  }
 0x146   :  { %v4721_v34 = vsel %vm915_vm3, %v926_v45, %v934_v63  ;;  %v942_v54 = vrot.slane %v890_v24, 6  ;;  %v1159_v24 = vrot.slane %v1074_v51, 1  ;;  %v4051_v55 = vld [vmem:[#allocation6 + $0x384] ss:$8 sps:$4 sm:$0xff]   ;;  %v4052_v51 = vld [vmem:[#allocation6 + $0x390] ss:$8 sps:$4 sm:$0xff]  }
 0x147   :  { %v941_v40 = vsel %vm915_vm3, %v932_v61, %v940_v53  ;;  %v1162_v53 = vrot.slane %v1075_v58, 1  ;;  %v4057_v58 = vld [vmem:[#allocation6 + $0x3a4] ss:$8 sps:$4 sm:$0xff]  }
 0x148   :  { %v1068_v32 = vld [vmem:[#allocation2 + $0x60] sm:$0xff]  ;;  %974 = vst [vmem:[#allocation2 + $0x70] sm:$0x3f] %v941_v40  ;;  %v943_v44 = vsel %vm915_vm3, %v934_v63, %v942_v54  ;;  %v4036_v54 = vld [vmem:[#allocation6 + $0x334] ss:$8 sps:$4 sm:$0xff]  }
 0x149   :  { %v1069_v36 = vld [vmem:[#allocation2 + $0x68] sm:$0xff]  ;;  %v1076_v37 = vpack.c.bf16 %v1068_v32, %v4702_v28  ;;  %975 = vst [vmem:[#allocation2 + $0x78] sm:$0x3f] %v943_v44 }
 0x14a   :  { %v1077_v41 = vpack.c.bf16 %v1069_v36, %v4705_v33  ;;  %v4039_v44 = vld [vmem:[#allocation6 + $0x344] ss:$8 sps:$4 sm:$0xff]  }
 0x14b   :  { %v1154_v26 = vrot.slane %v1076_v37, 1 }
 0x14c   :  { %v1157_v35 = vrot.slane %v1077_v41, 1  ;;  %v4034_v41 = vld [vmem:[#allocation6 + $0x330] ss:$8 sps:$4 sm:$0xff]  }
 0x14d   :  { %v1155_v45 = vsel %vm205_vm0, %v1153_v42, %v1154_v26  ;;  %v4037_v42 = vld [vmem:[#allocation6 + $0x340] ss:$8 sps:$4 sm:$0xff]  }
 0x14e   :  { %v1158_v56 = vsel %vm205_vm0, %v1156_v31, %v1157_v35  ;;  %v4042_v31 = vld [vmem:[#allocation6 + $0x354] ss:$8 sps:$4 sm:$0xff]  }
 0x14f   :  { %1525 = vmatprep.mubr.bf16.mxu0 %v1158_v56  ;;  %v1070_v61 = vld [vmem:[#allocation2 + $0x70] sm:$0xff]  ;;  %v4049_v56 = vld [vmem:[#allocation6 + $0x380] ss:$8 sps:$4 sm:$0xff]  }
 0x150   :  { %1526 = vmatmul.mubr.bf16.vlgmr.msra.gmra.mrb[8].mxu0 %v1155_v45  ;;  %v1071_v62 = vld [vmem:[#allocation2 + $0x78] sm:$0xff]  ;;  %v1078_v63 = vpack.c.bf16 %v1070_v61, %v4717_v27 }
 0x151   :  { %1547 = vmatpush1.bf16.msra.mxu0 %v4025_v48  ;;  %1535 = vmatprep.mubr.bf16.mxu0 %v1157_v35  ;;  %v1079_v25 = vpack.c.bf16 %v1071_v62, %v4721_v34  ;;  %v4040_v35 = vld [vmem:[#allocation6 + $0x350] ss:$8 sps:$4 sm:$0xff]   ;;  %v4043_v48 = vld [vmem:[#allocation6 + $0x360] ss:$8 sps:$4 sm:$0xff]   ;;  %v4048_v45 = vld [vmem:[#allocation6 + $0x374] ss:$8 sps:$4 sm:$0xff]  }
 0x152   :  { %1548 = vmatprep.subr.bf16.mxu0 %v4030_v57  ;;  %v4733_v32 = vrot.slane %v1078_v63, 1  ;;  %v4054_v57 = vld [vmem:[#allocation6 + $0x394] ss:$8 sps:$4 sm:$0xff]   ;;  %v4058_v61 = vld [vmem:[#allocation6 + $0x3b0] ss:$8 sps:$4 sm:$0xff]  }
 0x153   :  { %v1163_v36 = vrot.slane %v1079_v25, 1  ;;  %v4063_v62 = vld [vmem:[#allocation6 + $0x3c4] ss:$8 sps:$4 sm:$0xff]   ;;  %v4061_v63 = vld [vmem:[#allocation6 + $0x3c0] ss:$8 sps:$4 sm:$0xff]  }
 0x154   :  { %v1161_v37 = vsel %vm205_vm0, %v1159_v24, %v4733_v32  ;;  %v4066_v24 = vld [vmem:[#allocation6 + $0x3d4] ss:$8 sps:$4 sm:$0xff]   ;;  %v4064_v25 = vld [vmem:[#allocation6 + $0x3d0] ss:$8 sps:$4 sm:$0xff]  }
 0x155   :  { %1549 = vmatpush1.bf16.msra.mxu0 %v4028_v59  ;;  %v1164_v40 = vsel %vm205_vm0, %v1162_v53, %v1163_v36  ;;  %v4055_v59 = vld [vmem:[#allocation6 + $0x3a0] ss:$8 sps:$4 sm:$0xff]   ;;  %v4069_v53 = vld [vmem:[#allocation6 + $0x3e4] ss:$8 sps:$4 sm:$0xff]  }
 0x156   :  { %1550 = vmatprep.subr.bf16.mxu0 %v4033_v60  ;;  %v4060_v60 = vld [vmem:[#allocation6 + $0x3b4] ss:$8 sps:$4 sm:$0xff]  }
 0x158   :  { %1536 = vmatmul.mubr.bf16.gmra.mrb[12].mxu0 %v1154_v26  ;;  %v4046_v26 = vld [vmem:[#allocation6 + $0x370] ss:$8 sps:$4 sm:$0xff]  }
 0x159   :  { %1551 = vmatpush1.bf16.msra.mxu0 %v4031_v29  ;;  %1578 = vmatprep.mubr.bf16.mxu0 %v1164_v40  ;;  %v4067_v29 = vld [vmem:[#allocation6 + $0x3e0] ss:$8 sps:$4 sm:$0xff]   ;;  %v4070_v40 = vld [vmem:[#allocation6 + $0x3f0] ss:$8 sps:$4 sm:$0xff]  }
 0x15a   :  { %1552 = vmatprep.subr.bf16.mxu0 %v4036_v54  ;;  %v4072_v54 = vld [vmem:[#allocation6 + $0x3f4] ss:$8 sps:$4 sm:$0xff]  }
 0x15d   :  { %1553 = vmatpush1.bf16.msra.mxu0 %v4034_v41  ;;  %v4075_v41 = vld [vmem:[#allocation6 + $0x4] ss:$8 sps:$4 sm:$0xff]  }
 0x15e   :  { %1554 = vmatprep.subr.bf16.mxu0 %v4039_v44  ;;  %v4073_v44 = vld [vmem:[#allocation6] ss:$8 sps:$4 sm:$0xff]  }
 0x161   :  { %1555 = vmatpush1.bf16.msra.mxu0 %v4037_v42  ;;  %v4078_v42 = vld [vmem:[#allocation6 + $0x14] ss:$8 sps:$4 sm:$0xff]  }
 0x162   :  { %1556 = vmatprep.subr.bf16.mxu0 %v4042_v31  ;;  %v4076_v31 = vld [vmem:[#allocation6 + $0x10] ss:$8 sps:$4 sm:$0xff]  }
 0x165   :  { %1557 = vmatpush1.bf16.msra.mxu0 %v4040_v35  ;;  %v4081_v35 = vld [vmem:[#allocation6 + $0x24] ss:$8 sps:$4 sm:$0xff]  }
 0x166   :  { %1558 = vmatprep.subr.bf16.mxu0 %v4045_v47  ;;  %v977_v47 = vld [vmem:[#allocation2 + $0x8] sm:$0xff] }
 0x169   :  { %1559 = vmatpush1.bf16.msra.mxu0 %v4043_v48  ;;  %v4079_v48 = vld [vmem:[#allocation6 + $0x20] ss:$8 sps:$4 sm:$0xff]  }
 0x16a   :  { %1560 = vmatprep.subr.bf16.mxu0 %v4048_v45  ;;  %v4084_v45 = vld [vmem:[#allocation6 + $0x34] ss:$8 sps:$4 sm:$0xff]  }
 0x16d   :  { %1561 = vmatpush1.bf16.msra.mxu0 %v4046_v26  ;;  %v993_v26 = vpack.c.bf16 %v4699_v43, %v977_v47  ;;  %v4094_v43 = vld [vmem:[#allocation6 + $0x70] ss:$8 sps:$4 sm:$0xff]   ;;  %v4123_v47 = vld [vmem:[#allocation6 + $0x104] ss:$8 sps:$4 sm:$0xff]  }
 0x16e   :  { %1562 = vmatprep.subr.bf16.mxu0 %v4051_v55  ;;  %v4082_v55 = vld [vmem:[#allocation6 + $0x30] ss:$8 sps:$4 sm:$0xff]  }
 0x171   :  { %1563 = vmatpush1.bf16.msra.mxu0 %v4049_v56  ;;  %v4087_v56 = vld [vmem:[#allocation6 + $0x44] ss:$8 sps:$4 sm:$0xff]  }
 0x172   :  { %1564 = vmatprep.subr.bf16.mxu0 %v4054_v57  ;;  %v4088_v57 = vld [vmem:[#allocation6 + $0x50] ss:$8 sps:$4 sm:$0xff]  }
 0x175   :  { %1565 = vmatpush1.bf16.msra.mxu0 %v4052_v51  ;;  %v4093_v51 = vld [vmem:[#allocation6 + $0x64] ss:$8 sps:$4 sm:$0xff]  }
 0x176   :  { %1566 = vmatprep.subr.bf16.mxu0 %v4057_v58  ;;  %v4091_v58 = vld [vmem:[#allocation6 + $0x60] ss:$8 sps:$4 sm:$0xff]  }
 0x179   :  { %1567 = vmatpush1.bf16.msra.mxu0 %v4055_v59  ;;  %v4096_v59 = vld [vmem:[#allocation6 + $0x74] ss:$8 sps:$4 sm:$0xff]  }
 0x17a   :  { %1568 = vmatprep.subr.bf16.mxu0 %v4060_v60  ;;  %v4097_v60 = vld [vmem:[#allocation6 + $0x80] ss:$8 sps:$4 sm:$0xff]  }
 0x17d   :  { %1569 = vmatpush1.bf16.msra.mxu0 %v4058_v61  ;;  %v4102_v61 = vld [vmem:[#allocation6 + $0x94] ss:$8 sps:$4 sm:$0xff]  }
 0x17e   :  { %1570 = vmatprep.subr.bf16.mxu0 %v4063_v62  ;;  %v4100_v62 = vld [vmem:[#allocation6 + $0x90] ss:$8 sps:$4 sm:$0xff]  }
 0x181   :  { %1571 = vmatpush1.bf16.msra.mxu0 %v4061_v63  ;;  %v4105_v63 = vld [vmem:[#allocation6 + $0xa4] ss:$8 sps:$4 sm:$0xff]  }
 0x182   :  { %1572 = vmatprep.subr.bf16.mxu0 %v4066_v24  ;;  %v4103_v24 = vld [vmem:[#allocation6 + $0xa0] ss:$8 sps:$4 sm:$0xff]  }
 0x185   :  { %1573 = vmatpush1.bf16.msra.mxu0 %v4064_v25  ;;  %v4108_v25 = vld [vmem:[#allocation6 + $0xb4] ss:$8 sps:$4 sm:$0xff]  }
 0x186   :  { %1574 = vmatprep.subr.bf16.mxu0 %v4069_v53  ;;  %v4106_v53 = vld [vmem:[#allocation6 + $0xb0] ss:$8 sps:$4 sm:$0xff]  }
 0x189   :  { %1575 = vmatpush1.bf16.msra.mxu0 %v4067_v29  ;;  %v4111_v29 = vld [vmem:[#allocation6 + $0xc4] ss:$8 sps:$4 sm:$0xff]  }
 0x18a   :  { %1576 = vmatprep.subr.bf16.mxu0 %v4072_v54  ;;  %v4109_v54 = vld [vmem:[#allocation6 + $0xc0] ss:$8 sps:$4 sm:$0xff]  }
 0x18d   :  { %1577 = vmatpush1.bf16.msra.mxu0 %v4070_v40  ;;  %v4114_v40 = vld [vmem:[#allocation6 + $0xd4] ss:$8 sps:$4 sm:$0xff]  }
 0x18e   :  { %1919 = vmatprep.subr.bf16.mxu0 %v4075_v41  ;;  %v4112_v41 = vld [vmem:[#allocation6 + $0xd0] ss:$8 sps:$4 sm:$0xff]  }
 0x190   :  { %1579 = vmatmul.mubr.bf16.vlgmr.msra.gmra.mrb[8].mxu0 %v1161_v37  ;;  %v4090_v37 = vld [vmem:[#allocation6 + $0x54] ss:$8 sps:$4 sm:$0xff]  }
 0x191   :  { %1588 = vmatprep.mubr.bf16.mxu0 %v1163_v36  ;;  %1920 = vmatpush1.bf16.msra.mxu0 %v4073_v44  ;;  %v4085_v36 = vld [vmem:[#allocation6 + $0x40] ss:$8 sps:$4 sm:$0xff]   ;;  %v4117_v44 = vld [vmem:[#allocation6 + $0xe4] ss:$8 sps:$4 sm:$0xff]  }
 0x192   :  { %1921 = vmatprep.subr.bf16.mxu0 %v4078_v42  ;;  %v4115_v42 = vld [vmem:[#allocation6 + $0xe0] ss:$8 sps:$4 sm:$0xff]  }
 0x195   :  { %1922 = vmatpush1.bf16.msra.mxu0 %v4076_v31  ;;  %v4120_v31 = vld [vmem:[#allocation6 + $0xf4] ss:$8 sps:$4 sm:$0xff]  }
 0x196   :  { %1923 = vmatprep.subr.bf16.mxu0 %v4081_v35  ;;  %v4118_v35 = vld [vmem:[#allocation6 + $0xf0] ss:$8 sps:$4 sm:$0xff]  }
 0x198   :  { %1589 = vmatmul.mubr.bf16.gmra.mrb[12].mxu0 %v4733_v32  ;;  %v4099_v32 = vld [vmem:[#allocation6 + $0x84] ss:$8 sps:$4 sm:$0xff]  }
 0x199   :  { %1924 = vmatpush1.bf16.msra.mxu0 %v4079_v48  ;;  %1951 = vmatprep.mubr.bf16.mxu0 %v993_v26  ;;  %v976_v48 = vld [vmem:[#allocation2] sm:$0xff] }
 0x19a   :  { %1925 = vmatprep.subr.bf16.mxu0 %v4084_v45  ;;  %v989_v45 = vld [vmem:[#allocation2 + $0x68] sm:$0x3f] }
 0x19b   :  { %v4121_v26 = vld [vmem:[#allocation6 + $0x100] ss:$8 sps:$4 sm:$0xff]  }
 0x19d   :  { %1926 = vmatpush1.bf16.msra.mxu0 %v4082_v55  ;;  %v992_v55 = vpack.c.bf16 %v4696_v39, %v976_v48  ;;  %v4162_v48 = vld [vmem:[#allocation6 + $0x1d4] ss:$8 sps:$4 sm:$0xff]  }
 0x19e   :  { %1927 = vmatprep.subr.bf16.mxu0 %v4087_v56  ;;  %v4126_v56 = vld [vmem:[#allocation6 + $0x114] ss:$8 sps:$4 sm:$0xff]  }
 0x1a1   :  { %1928 = vmatpush1.bf16.msra.mxu0 %v4085_v36  ;;  %v997_v36 = vpack.c.bf16 %v989_v45, %v4705_v33  ;;  %v4130_v33 = vld [vmem:[#allocation6 + $0x130] ss:$8 sps:$4 sm:$0xff]  }
 0x1a2   :  { %1929 = vmatprep.subr.bf16.mxu0 %v4090_v37  ;;  %v4124_v37 = vld [vmem:[#allocation6 + $0x110] ss:$8 sps:$4 sm:$0xff]  }
 0x1a3   :  { %v4160_v45 = vld [vmem:[#allocation6 + $0x1d0] ss:$8 sps:$4 sm:$0xff]  }
 0x1a5   :  { %1930 = vmatpush1.bf16.msra.mxu0 %v4088_v57  ;;  %v4129_v57 = vld [vmem:[#allocation6 + $0x124] ss:$8 sps:$4 sm:$0xff]  }
 0x1a6   :  { %1931 = vmatprep.subr.bf16.mxu0 %v4093_v51  ;;  %v988_v51 = vld [vmem:[#allocation2 + $0x60] sm:$0x3f] }
 0x1a9   :  { %1932 = vmatpush1.bf16.msra.mxu0 %v4091_v58  ;;  %v979_v58 = vld [vmem:[#allocation2 + $0x18] sm:$0xff] }
 0x1aa   :  { %1933 = vmatprep.subr.bf16.mxu0 %v4096_v59  ;;  %v4127_v59 = vld [vmem:[#allocation6 + $0x120] ss:$8 sps:$4 sm:$0xff]   ;;  %v995_v39 = vpack.c.bf16 %v4713_v46, %v979_v58  ;;  %v4142_v46 = vld [vmem:[#allocation6 + $0x170] ss:$8 sps:$4 sm:$0xff]  }
 0x1ad   :  { %1934 = vmatpush1.bf16.msra.mxu0 %v4094_v43  ;;  %v996_v43 = vpack.c.bf16 %v988_v51, %v4702_v28  ;;  %v4139_v28 = vld [vmem:[#allocation6 + $0x160] ss:$8 sps:$4 sm:$0xff]  }
 0x1ae   :  { %1935 = vmatprep.subr.bf16.mxu0 %v4099_v32  ;;  %v4132_v32 = vld [vmem:[#allocation6 + $0x134] ss:$8 sps:$4 sm:$0xff]  }
 0x1b1   :  { %1936 = vmatpush1.bf16.msra.mxu0 %v4097_v60  ;;  %v4135_v60 = vld [vmem:[#allocation6 + $0x144] ss:$8 sps:$4 sm:$0xff]  }
 0x1b2   :  { %1937 = vmatprep.subr.bf16.mxu0 %v4102_v61  ;;  %v4133_v61 = vld [vmem:[#allocation6 + $0x140] ss:$8 sps:$4 sm:$0xff]  }
 0x1b5   :  { %1938 = vmatpush1.bf16.msra.mxu0 %v4100_v62  ;;  %v4138_v62 = vld [vmem:[#allocation6 + $0x154] ss:$8 sps:$4 sm:$0xff]  }
 0x1b6   :  { %1939 = vmatprep.subr.bf16.mxu0 %v4105_v63  ;;  %v4136_v63 = vld [vmem:[#allocation6 + $0x150] ss:$8 sps:$4 sm:$0xff]  }
 0x1b9   :  { %1940 = vmatpush1.bf16.msra.mxu0 %v4103_v24  ;;  %v4141_v24 = vld [vmem:[#allocation6 + $0x164] ss:$8 sps:$4 sm:$0xff]  }
 0x1ba   :  { %1941 = vmatprep.subr.bf16.mxu0 %v4108_v25  ;;  %v4144_v25 = vld [vmem:[#allocation6 + $0x174] ss:$8 sps:$4 sm:$0xff]  }
 0x1bd   :  { %1942 = vmatpush1.bf16.msra.mxu0 %v4106_v53  ;;  %v4147_v53 = vld [vmem:[#allocation6 + $0x184] ss:$8 sps:$4 sm:$0xff]  }
 0x1be   :  { %1943 = vmatprep.subr.bf16.mxu0 %v4111_v29  ;;  %v4145_v29 = vld [vmem:[#allocation6 + $0x180] ss:$8 sps:$4 sm:$0xff]  }
 0x1c1   :  { %1944 = vmatpush1.bf16.msra.mxu0 %v4109_v54  ;;  %v4150_v54 = vld [vmem:[#allocation6 + $0x194] ss:$8 sps:$4 sm:$0xff]  }
 0x1c2   :  { %1945 = vmatprep.subr.bf16.mxu0 %v4114_v40  ;;  %v4148_v40 = vld [vmem:[#allocation6 + $0x190] ss:$8 sps:$4 sm:$0xff]  }
 0x1c5   :  { %1946 = vmatpush1.bf16.msra.mxu0 %v4112_v41  ;;  %v4153_v41 = vld [vmem:[#allocation6 + $0x1a4] ss:$8 sps:$4 sm:$0xff]  }
 0x1c6   :  { %1947 = vmatprep.subr.bf16.mxu0 %v4117_v44  ;;  %v4151_v44 = vld [vmem:[#allocation6 + $0x1a0] ss:$8 sps:$4 sm:$0xff]  }
 0x1c9   :  { %1948 = vmatpush1.bf16.msra.mxu0 %v4115_v42  ;;  %v4156_v42 = vld [vmem:[#allocation6 + $0x1b4] ss:$8 sps:$4 sm:$0xff]  }
 0x1ca   :  { %1949 = vmatprep.subr.bf16.mxu0 %v4120_v31  ;;  %v4154_v31 = vld [vmem:[#allocation6 + $0x1b0] ss:$8 sps:$4 sm:$0xff]  }
 0x1cd   :  { %1950 = vmatpush1.bf16.msra.mxu0 %v4118_v35  ;;  %v4159_v35 = vld [vmem:[#allocation6 + $0x1c4] ss:$8 sps:$4 sm:$0xff]  }
 0x1ce   :  { %1972 = vmatprep.subr.bf16.mxu0 %v4123_v47  ;;  %v4157_v47 = vld [vmem:[#allocation6 + $0x1c0] ss:$8 sps:$4 sm:$0xff]  }
 0x1d0   :  { %1952 = vmatmul.mubr.bf16.vlgmr.msra.gmra.mrb[8].mxu0 %v992_v55  ;;  %v4163_v55 = vld [vmem:[#allocation6 + $0x1e0] ss:$8 sps:$4 sm:$0xff]  }
 0x1d1   :  { %1961 = vmatprep.mubr.bf16.mxu0 %v997_v36  ;;  %1973 = vmatpush1.bf16.msra.mxu0 %v4121_v26  ;;  %v4165_v26 = vld [vmem:[#allocation6 + $0x1e4] ss:$8 sps:$4 sm:$0xff]   ;;  %v4166_v36 = vld [vmem:[#allocation6 + $0x1f0] ss:$8 sps:$4 sm:$0xff]  }
 0x1d2   :  { %1974 = vmatprep.subr.bf16.mxu0 %v4126_v56  ;;  %v4168_v56 = vld [vmem:[#allocation6 + $0x1f4] ss:$8 sps:$4 sm:$0xff]  }
 0x1d5   :  { %1975 = vmatpush1.bf16.msra.mxu0 %v4124_v37  ;;  %v978_v37 = vld [vmem:[#allocation2 + $0x10] sm:$0xff] }
 0x1d6   :  { %1976 = vmatprep.subr.bf16.mxu0 %v4129_v57  ;;  %v991_v57 = vld [vmem:[#allocation2 + $0x78] sm:$0x3f]  ;;  %v994_v51 = vpack.c.bf16 %v4710_v30, %v978_v37  ;;  %v2025_v30 = vld [vmem:[%s4896_s4] sm:$0x3] }
 0x1d7   :  { %v999_v58 = vpack.c.bf16 %v991_v57, %v4721_v34  ;;  %v2030_v34 = vrot.slane %v2025_v30, %v4684_v50 }
 0x1d8   :  { %1962 = vmatmul.mubr.bf16.gmra.mrb[12].mxu0 %v996_v43 }
 0x1d9   :  { %1977 = vmatpush1.bf16.msra.mxu0 %v4127_v59  ;;  %2004 = vmatprep.mubr.bf16.mxu0 %v995_v39  ;;  %v990_v59 = vld [vmem:[#allocation2 + $0x70] sm:$0x3f]  ;;  %v4755_v39 = vld [vmem:[%s4897_s5] sm:$0xf] }
 0x1da   :  { %1978 = vmatprep.subr.bf16.mxu0 %v4132_v32  ;;  %v998_v43 = vpack.c.bf16 %v990_v59, %v4717_v27  ;;  %v4750_v32 = vld [vmem:[%s4902_s10] sm:$0x1]  ;;  %v2034_v27 = vrot.slane %v2025_v30, %v845_v52 }
 0x1dd   :  { %1979 = vmatpush1.bf16.msra.mxu0 %v4130_v33 }
 0x1de   :  { %1980 = vmatprep.subr.bf16.mxu0 %v4135_v60 }
 0x1e1   :  { %1981 = vmatpush1.bf16.msra.mxu0 %v4133_v61 }
 0x1e2   :  { %1982 = vmatprep.subr.bf16.mxu0 %v4138_v62 }
 0x1e5   :  { %1983 = vmatpush1.bf16.msra.mxu0 %v4136_v63 }
 0x1e6   :  { %1984 = vmatprep.subr.bf16.mxu0 %v4141_v24 }
 0x1e9   :  { %1985 = vmatpush1.bf16.msra.mxu0 %v4139_v28 }
 0x1ea   :  { %1986 = vmatprep.subr.bf16.mxu0 %v4144_v25 }
 0x1ed   :  { %1987 = vmatpush1.bf16.msra.mxu0 %v4142_v46 }
 0x1ee   :  { %1988 = vmatprep.subr.bf16.mxu0 %v4147_v53 }
 0x1f1   :  { %1989 = vmatpush1.bf16.msra.mxu0 %v4145_v29 }
 0x1f2   :  { %1990 = vmatprep.subr.bf16.mxu0 %v4150_v54 }
 0x1f5   :  { %1991 = vmatpush1.bf16.msra.mxu0 %v4148_v40 }
 0x1f6   :  { %1992 = vmatprep.subr.bf16.mxu0 %v4153_v41 }
 0x1f9   :  { %1993 = vmatpush1.bf16.msra.mxu0 %v4151_v44 }
 0x1fa   :  { %1994 = vmatprep.subr.bf16.mxu0 %v4156_v42 }
 0x1fd   :  { %1995 = vmatpush1.bf16.msra.mxu0 %v4154_v31 }
 0x1fe   :  { %1996 = vmatprep.subr.bf16.mxu0 %v4159_v35 }
 0x201   :  { %1997 = vmatpush1.bf16.msra.mxu0 %v4157_v47 }
 0x202   :  { %1998 = vmatprep.subr.bf16.mxu0 %v4162_v48 }
 0x205   :  { %1999 = vmatpush1.bf16.msra.mxu0 %v4160_v45 }
 0x206   :  { %2000 = vmatprep.subr.bf16.mxu0 %v4165_v26 }
 0x209   :  { %2001 = vmatpush1.bf16.msra.mxu0 %v4163_v55 }
 0x20a   :  { %2002 = vmatprep.subr.bf16.mxu0 %v4168_v56 }
 0x20d   :  { %2003 = vmatpush1.bf16.msra.mxu0 %v4166_v36 }
 0x210   :  { %2005 = vmatmul.mubr.bf16.vlgmr.msra.gmra.mrb[8].mxu0 %v994_v51 }
 0x211   :  { %2014 = vmatprep.mubr.bf16.mxu0 %v999_v58 }
 0x218   :  { %2015 = vmatmul.mubr.bf16.gmra.mrb[12].mxu0 %v998_v43 }
 0x2e3   :  { %v2006_v33 = vpop.f32.mrb[8].mxu0 }
 0x2e4   :  { %v2037_v60 = vadd.f32 %v2030_v34, %v2006_v33  ;;  %v2008_v61 = vpop.f32.mrb[9].mxu0 }
 0x2e5   :  { %v2038_v62 = vadd.f32 %v2034_v27, %v2008_v61  ;;  %v2010_v63 = vpop.f32.mrb[10].mxu0 }
 0x2e6   :  { %v2039_v24 = vadd.f32 %v2030_v34, %v2010_v63  ;;  %v2012_v28 = vpop.f32.mrb[11].mxu0  ;;  %v2045_v46 = vmax.f32 %v2037_v60, 0.0 }
 0x2e7   :  { %v2040_v25 = vadd.f32 %v2034_v27, %v2012_v28  ;;  %v2046_v29 = vmax.f32 %v2038_v62, 0.0 }
 0x2e8   :  { %v2047_v53 = vmax.f32 %v2039_v24, 0.0 }
 0x2e9   :  { %v2048_v54 = vmax.f32 %v2040_v25, 0.0 }
 0x2ea   :  { %v4763_v40 = vpack.c.bf16 %v2047_v53, %v2045_v46 }
 0x2eb   :  { %v4765_v41 = vpack.c.bf16 %v2048_v54, %v2046_v29  ;;  %v2016_v44 = vpop.f32.mrb[12].mxu0 }
 0x2ec   :  { %v2041_v42 = vadd.f32 %v2030_v34, %v2016_v44  ;;  %v2018_v49 = vpop.f32.mrb[13].mxu0 }
 0x2ed   :  { %v2042_v52 = vadd.f32 %v2034_v27, %v2018_v49  ;;  %v2020_v31 = vpop.f32.mrb[14].mxu0 }
 0x2ee   :  { %v2043_v35 = vadd.f32 %v2030_v34, %v2020_v31  ;;  %v2022_v47 = vpop.f32.mrb[15].mxu0  ;;  %v2049_v45 = vmax.f32 %v2041_v42, 0.0 }
 0x2ef   :  { %v2044_v48 = vadd.f32 %v2034_v27, %v2022_v47  ;;  %v2050_v55 = vmax.f32 %v2042_v52, 0.0 }
 0x2f0   :  { %v2051_v26 = vmax.f32 %v2043_v35, 0.0 }
 0x2f1   :  { %v2052_v56 = vmax.f32 %v2044_v48, 0.0 }
 0x2f2   :  { %v4767_v36 = vpack.c.bf16 %v2051_v26, %v2049_v45 }
 0x2f3   :  { %v4769_v37 = vpack.c.bf16 %v2052_v56, %v2050_v55 }
 0x2f4   :  { %4237 = dma.done.wait [#allocation5], 30720 }
 0x2f5   :  { %4238 = vsyncadd [#allocation5], 4294936576  ;;  %2111 = vmatprep.mubr.bf16.mxu1 %v4765_v41  ;;  %2644 = vmatprep.mubr.bf16.mxu0 %v4769_v37  ;;  %v2071_v57 = vld [vmem:[#allocation3 + $0x40] sm:$0xff]  ;;  %v2072_v58 = vld [vmem:[#allocation3 + $0x48] sm:$0xff]  ;;  %vm2123_vm4 = vcmask 1043456   ;;  %vm4249_vm5 = vmmov 0  }
 0x2f6   :  { %v2063_v51 = vld [vmem:[#allocation3] sm:$0xff]  ;;  %3468 = vmatprep.subr.bf16.mxu1 %v2071_v57  ;;  %v2064_v59 = vld [vmem:[#allocation3 + $0x8] sm:$0xff]  ;;  %v2073_v43 = vld [vmem:[#allocation3 + $0x50] sm:$0xff]  ;;  %v2125_v46 = vsel %vm2123_vm4, %v4755_v39, 0  ;;  %vm2119_vm6 = vcmask 64512   ;;  %v2186_v29 = vrot.slane %v4765_v41, 1 }
 0x2f7   :  { %3469 = vmatpush3.bf16.msra.mxu1 %v2063_v51  ;;  %v2065_v30 = vld [vmem:[#allocation3 + $0x10] sm:$0xff]  ;;  %v2074_v34 = vld [vmem:[#allocation3 + $0x58] sm:$0xff]  ;;  %v2075_v33 = vld [vmem:[#allocation3 + $0x60] sm:$0xff]  ;;  %v2185_v51 = vrot.slane %v4763_v40, 1 }
 0x2f8   :  { %3470 = vmatprep.subr.bf16.mxu1 %v2072_v58  ;;  %v2066_v27 = vld [vmem:[#allocation3 + $0x18] sm:$0xff]  ;;  %v2067_v60 = vld [vmem:[#allocation3 + $0x20] sm:$0xff]  ;;  %v2076_v61 = vld [vmem:[#allocation3 + $0x68] sm:$0xff]  ;;  %v2247_v58 = vrot.slane %v4765_v41, 2 }
 0x2f9   :  { %v2068_v62 = vld [vmem:[#allocation3 + $0x28] sm:$0xff]  ;;  %v2077_v63 = vld [vmem:[#allocation3 + $0x70] sm:$0xff]  ;;  %v2078_v28 = vld [vmem:[#allocation3 + $0x78] sm:$0xff] }
 0x2fa   :  { %v2069_v24 = vld [vmem:[#allocation3 + $0x30] sm:$0xff]  ;;  %v2070_v25 = vld [vmem:[#allocation3 + $0x38] sm:$0xff]  ;;  %v2175_v53 = vld [vmem:[#allocation3 + $0xc0] sm:$0xff] }
 0x2fb   :  { %3471 = vmatpush3.bf16.msra.mxu1 %v2064_v59  ;;  %v2167_v54 = vld [vmem:[#allocation3 + $0x80] sm:$0xff]  ;;  %v2176_v44 = vld [vmem:[#allocation3 + $0xc8] sm:$0xff]  ;;  %v2177_v42 = vld [vmem:[#allocation3 + $0xd0] sm:$0xff] }
 0x2fc   :  { %3472 = vmatprep.subr.bf16.mxu1 %v2073_v43  ;;  %v2168_v39 = vld [vmem:[#allocation3 + $0x88] sm:$0xff]  ;;  %v2169_v49 = vld [vmem:[#allocation3 + $0x90] sm:$0xff]  ;;  %v2178_v52 = vld [vmem:[#allocation3 + $0xd8] sm:$0xff] }
 0x2fd   :  { %v2170_v31 = vld [vmem:[#allocation3 + $0x98] sm:$0xff]  ;;  %v2179_v35 = vld [vmem:[#allocation3 + $0xe0] sm:$0xff]  ;;  %v2180_v48 = vld [vmem:[#allocation3 + $0xe8] sm:$0xff] }
 0x2fe   :  { %v2171_v47 = vld [vmem:[#allocation3 + $0xa0] sm:$0xff]  ;;  %v2181_v45 = vld [vmem:[#allocation3 + $0xf0] sm:$0xff]  ;;  %v2182_v55 = vld [vmem:[#allocation3 + $0xf8] sm:$0xff] }
 0x2ff   :  { %3473 = vmatpush3.bf16.msra.mxu1 %v2065_v30  ;;  %v2173_v26 = vld [vmem:[#allocation3 + $0xb0] sm:$0xff]  ;;  %v2174_v56 = vld [vmem:[#allocation3 + $0xb8] sm:$0xff]  ;;  %v2238_v57 = vld [vmem:[#allocation3 + $0x140] sm:$0xff] }
 0x300   :  { %3474 = vmatprep.subr.bf16.mxu1 %v2074_v34  ;;  %v2230_v59 = vld [vmem:[#allocation3 + $0x100] sm:$0xff]  ;;  %v2239_v43 = vld [vmem:[#allocation3 + $0x148] sm:$0xff]  ;;  %v2240_v34 = vld [vmem:[#allocation3 + $0x150] sm:$0xff] }
 0x301   :  { %v2231_v30 = vld [vmem:[#allocation3 + $0x108] sm:$0xff] }
 0x303   :  { %3475 = vmatpush3.bf16.msra.mxu1 %v2066_v27  ;;  %v2232_v27 = vld [vmem:[#allocation3 + $0x110] sm:$0xff] }
 0x304   :  { %3476 = vmatprep.subr.bf16.mxu1 %v2075_v33  ;;  %v2241_v33 = vld [vmem:[#allocation3 + $0x158] sm:$0xff] }
 0x307   :  { %3477 = vmatpush3.bf16.msra.mxu1 %v2067_v60  ;;  %v2233_v60 = vld [vmem:[#allocation3 + $0x118] sm:$0xff] }
 0x308   :  { %3478 = vmatprep.subr.bf16.mxu1 %v2076_v61  ;;  %v2242_v61 = vld [vmem:[#allocation3 + $0x160] sm:$0xff] }
 0x30b   :  { %3479 = vmatpush3.bf16.msra.mxu1 %v2068_v62  ;;  %v2234_v62 = vld [vmem:[#allocation3 + $0x120] sm:$0xff] }
 0x30c   :  { %3480 = vmatprep.subr.bf16.mxu1 %v2077_v63  ;;  %v2243_v63 = vld [vmem:[#allocation3 + $0x168] sm:$0xff] }
 0x30f   :  { %3481 = vmatpush3.bf16.msra.mxu1 %v2069_v24  ;;  %v2235_v24 = vld [vmem:[#allocation3 + $0x128] sm:$0xff] }
 0x310   :  { %3482 = vmatprep.subr.bf16.mxu1 %v2078_v28  ;;  %v2244_v28 = vld [vmem:[#allocation3 + $0x170] sm:$0xff] }
 0x313   :  { %3483 = vmatpush3.bf16.msra.mxu1 %v2070_v25  ;;  %v2236_v25 = vld [vmem:[#allocation3 + $0x130] sm:$0xff] }
 0x314   :  { %3809 = vmatprep.subr.bf16.mxu1 %v4248_v38 }
 0x316   :  { %2112 = vmatmul.mubr.bf16.vlgmr.msra.gmra.mrb[8].mxu1 %v4763_v40 }
 0x317   :  { %3810 = vmatpush3.bf16.msra.mxu1 %v2125_v46  ;;  %3811 = vmatprep.mubr.msk.bf16.mxu1 %vm4249_vm5, %v4248_v38  ;;  %v2245_v46 = vld [vmem:[#allocation3 + $0x178] sm:$0xff] }
 0x318   :  { %3492 = vmatprep.subr.bf16.mxu1 %v2175_v53  ;;  %v2237_v53 = vld [vmem:[#allocation3 + $0x138] sm:$0xff] }
 0x31e   :  { %3812 = vmatmul.mubr.msk.bf16.vlgmr.msra.gmra.mrb[12].mxu1 %vm2119_vm6, %v4750_v32  ;;  %v2172_v32 = vld [vmem:[#allocation3 + $0xa8] sm:$0xff] }
 0x31f   :  { %3493 = vmatpush3.bf16.msra.mxu1 %v2167_v54  ;;  %2221 = vmatprep.mubr.bf16.mxu1 %v2186_v29  ;;  %v2299_v29 = vld [vmem:[#allocation3 + $0x1c0] sm:$0xff]  ;;  %v2246_v54 = vrot.slane %v4763_v40, 2 }
 0x320   :  { %3494 = vmatprep.subr.bf16.mxu1 %v2176_v44  ;;  %v2308_v44 = vrot.slane %v4765_v41, 3 }
 0x323   :  { %3495 = vmatpush3.bf16.msra.mxu1 %v2168_v39  ;;  %v2291_v39 = vld [vmem:[#allocation3 + $0x180] sm:$0xff] }
 0x324   :  { %3496 = vmatprep.subr.bf16.mxu1 %v2177_v42  ;;  %v2604_v42 = vld [vmem:[#allocation3 + $0x440] sm:$0xff] }
 0x325   :  { %3646 = vmatprep.subr.bf16.mxu0 %v2604_v42  ;;  %v2724_v42 = vld [vmem:[#allocation3 + $0x540] sm:$0xff] }
 0x327   :  { %3497 = vmatpush3.bf16.msra.mxu1 %v2169_v49  ;;  %v2300_v49 = vld [vmem:[#allocation3 + $0x1c8] sm:$0xff] }
 0x328   :  { %3498 = vmatprep.subr.bf16.mxu1 %v2178_v52  ;;  %v2596_v52 = vld [vmem:[#allocation3 + $0x400] sm:$0xff] }
 0x329   :  { %3647 = vmatpush3.bf16.msra.mxu0 %v2596_v52  ;;  %v2716_v52 = vld [vmem:[#allocation3 + $0x500] sm:$0xff] }
 0x32b   :  { %3499 = vmatpush3.bf16.msra.mxu1 %v2170_v31  ;;  %v2292_v31 = vld [vmem:[#allocation3 + $0x188] sm:$0xff] }
 0x32c   :  { %3500 = vmatprep.subr.bf16.mxu1 %v2179_v35  ;;  %v2605_v35 = vld [vmem:[#allocation3 + $0x448] sm:$0xff] }
 0x32d   :  { %3648 = vmatprep.subr.bf16.mxu0 %v2605_v35  ;;  %v2725_v35 = vld [vmem:[#allocation3 + $0x548] sm:$0xff] }
 0x32f   :  { %3501 = vmatpush3.bf16.msra.mxu1 %v2171_v47  ;;  %v2301_v47 = vld [vmem:[#allocation3 + $0x1d0] sm:$0xff] }
 0x330   :  { %3502 = vmatprep.subr.bf16.mxu1 %v2180_v48  ;;  %v2597_v48 = vld [vmem:[#allocation3 + $0x408] sm:$0xff] }
 0x331   :  { %3649 = vmatpush3.bf16.msra.mxu0 %v2597_v48  ;;  %v2717_v48 = vld [vmem:[#allocation3 + $0x508] sm:$0xff] }
 0x333   :  { %3503 = vmatpush3.bf16.msra.mxu1 %v2172_v32  ;;  %v2293_v32 = vld [vmem:[#allocation3 + $0x190] sm:$0xff] }
 0x334   :  { %3504 = vmatprep.subr.bf16.mxu1 %v2181_v45  ;;  %v2606_v45 = vld [vmem:[#allocation3 + $0x450] sm:$0xff] }
 0x335   :  { %3650 = vmatprep.subr.bf16.mxu0 %v2606_v45  ;;  %v2726_v45 = vld [vmem:[#allocation3 + $0x550] sm:$0xff] }
 0x337   :  { %3505 = vmatpush3.bf16.msra.mxu1 %v2173_v26  ;;  %v2302_v26 = vld [vmem:[#allocation3 + $0x1d8] sm:$0xff] }
 0x338   :  { %3506 = vmatprep.subr.bf16.mxu1 %v2182_v55  ;;  %v2598_v55 = vld [vmem:[#allocation3 + $0x410] sm:$0xff] }
 0x339   :  { %3651 = vmatpush3.bf16.msra.mxu0 %v2598_v55  ;;  %v2718_v55 = vld [vmem:[#allocation3 + $0x510] sm:$0xff] }
 0x33b   :  { %3507 = vmatpush3.bf16.msra.mxu1 %v2174_v56  ;;  %v2294_v56 = vld [vmem:[#allocation3 + $0x198] sm:$0xff] }
 0x33c   :  { %3514 = vmatprep.subr.bf16.mxu1 %v2238_v57  ;;  %v2607_v57 = vld [vmem:[#allocation3 + $0x458] sm:$0xff] }
 0x33d   :  { %3652 = vmatprep.subr.bf16.mxu0 %v2607_v57  ;;  %v2727_v57 = vld [vmem:[#allocation3 + $0x558] sm:$0xff] }
 0x33e   :  { %2222 = vmatmul.mubr.bf16.vlgmr.msra.gmra.mrb[16].mxu1 %v2185_v51  ;;  %v2303_v51 = vld [vmem:[#allocation3 + $0x1e0] sm:$0xff] }
 0x33f   :  { %3515 = vmatpush3.bf16.msra.mxu1 %v2230_v59  ;;  %2282 = vmatprep.mubr.bf16.mxu1 %v2247_v58  ;;  %v2599_v58 = vld [vmem:[#allocation3 + $0x418] sm:$0xff]  ;;  %v2295_v59 = vld [vmem:[#allocation3 + $0x1a0] sm:$0xff] }
 0x340   :  { %3516 = vmatprep.subr.bf16.mxu1 %v2239_v43  ;;  %3653 = vmatpush3.bf16.msra.mxu0 %v2599_v58  ;;  %v2608_v43 = vld [vmem:[#allocation3 + $0x460] sm:$0xff]  ;;  %v2719_v58 = vld [vmem:[#allocation3 + $0x518] sm:$0xff] }
 0x341   :  { %3654 = vmatprep.subr.bf16.mxu0 %v2608_v43  ;;  %v2728_v43 = vld [vmem:[#allocation3 + $0x560] sm:$0xff] }
 0x343   :  { %3517 = vmatpush3.bf16.msra.mxu1 %v2231_v30  ;;  %v2304_v30 = vld [vmem:[#allocation3 + $0x1e8] sm:$0xff] }
 0x344   :  { %3518 = vmatprep.subr.bf16.mxu1 %v2240_v34  ;;  %v2600_v34 = vld [vmem:[#allocation3 + $0x420] sm:$0xff] }
 0x345   :  { %3655 = vmatpush3.bf16.msra.mxu0 %v2600_v34  ;;  %v2720_v34 = vld [vmem:[#allocation3 + $0x520] sm:$0xff] }
 0x347   :  { %3519 = vmatpush3.bf16.msra.mxu1 %v2232_v27  ;;  %v2296_v27 = vld [vmem:[#allocation3 + $0x1a8] sm:$0xff] }
 0x348   :  { %3520 = vmatprep.subr.bf16.mxu1 %v2241_v33  ;;  %v2609_v33 = vld [vmem:[#allocation3 + $0x468] sm:$0xff] }
 0x349   :  { %3656 = vmatprep.subr.bf16.mxu0 %v2609_v33  ;;  %v2729_v33 = vld [vmem:[#allocation3 + $0x568] sm:$0xff] }
 0x34b   :  { %3521 = vmatpush3.bf16.msra.mxu1 %v2233_v60  ;;  %v2305_v60 = vld [vmem:[#allocation3 + $0x1f0] sm:$0xff] }
 0x34c   :  { %3522 = vmatprep.subr.bf16.mxu1 %v2242_v61  ;;  %v2601_v61 = vld [vmem:[#allocation3 + $0x428] sm:$0xff] }
 0x34d   :  { %3657 = vmatpush3.bf16.msra.mxu0 %v2601_v61  ;;  %v2721_v61 = vld [vmem:[#allocation3 + $0x528] sm:$0xff] }
 0x34f   :  { %3523 = vmatpush3.bf16.msra.mxu1 %v2234_v62  ;;  %v2297_v62 = vld [vmem:[#allocation3 + $0x1b0] sm:$0xff] }
 0x350   :  { %3524 = vmatprep.subr.bf16.mxu1 %v2243_v63  ;;  %v2610_v63 = vld [vmem:[#allocation3 + $0x470] sm:$0xff] }
 0x351   :  { %3658 = vmatprep.subr.bf16.mxu0 %v2610_v63  ;;  %v2730_v63 = vld [vmem:[#allocation3 + $0x570] sm:$0xff] }
 0x353   :  { %3525 = vmatpush3.bf16.msra.mxu1 %v2235_v24  ;;  %v2306_v24 = vld [vmem:[#allocation3 + $0x1f8] sm:$0xff] }
 0x354   :  { %3526 = vmatprep.subr.bf16.mxu1 %v2244_v28  ;;  %v2602_v28 = vld [vmem:[#allocation3 + $0x430] sm:$0xff] }
 0x355   :  { %3659 = vmatpush3.bf16.msra.mxu0 %v2602_v28  ;;  %v2722_v28 = vld [vmem:[#allocation3 + $0x530] sm:$0xff] }
 0x357   :  { %3527 = vmatpush3.bf16.msra.mxu1 %v2236_v25  ;;  %v2298_v25 = vld [vmem:[#allocation3 + $0x1b8] sm:$0xff] }
 0x358   :  { %3528 = vmatprep.subr.bf16.mxu1 %v2245_v46  ;;  %v2611_v46 = vld [vmem:[#allocation3 + $0x478] sm:$0xff] }
 0x359   :  { %3660 = vmatprep.subr.bf16.mxu0 %v2611_v46  ;;  %v2731_v46 = vld [vmem:[#allocation3 + $0x578] sm:$0xff] }
 0x35b   :  { %3529 = vmatpush3.bf16.msra.mxu1 %v2237_v53  ;;  %v2360_v53 = vld [vmem:[#allocation3 + $0x240] sm:$0xff] }
 0x35c   :  { %3536 = vmatprep.subr.bf16.mxu1 %v2299_v29  ;;  %v2603_v29 = vld [vmem:[#allocation3 + $0x438] sm:$0xff] }
 0x35d   :  { %3661 = vmatpush3.bf16.msra.mxu0 %v2603_v29  ;;  %v2723_v29 = vld [vmem:[#allocation3 + $0x538] sm:$0xff] }
 0x35e   :  { %2283 = vmatmul.mubr.bf16.vlgmr.msra.gmra.mrb[20].mxu1 %v2246_v54  ;;  %v2307_v54 = vrot.slane %v4763_v40, 3  ;;  %3690 = vmatprep.subr.bf16.mxu0 %v2724_v42  ;;  %v2413_v42 = vld [vmem:[#allocation3 + $0x280] sm:$0xff] }
 0x35f   :  { %3537 = vmatpush3.bf16.msra.mxu1 %v2291_v39  ;;  %2343 = vmatprep.mubr.bf16.mxu1 %v2308_v44  ;;  %v2369_v44 = vrot.slane %v4765_v41, 4  ;;  %v2352_v39 = vld [vmem:[#allocation3 + $0x200] sm:$0xff] }
 0x360   :  { %3538 = vmatprep.subr.bf16.mxu1 %v2300_v49  ;;  %v2361_v49 = vld [vmem:[#allocation3 + $0x248] sm:$0xff]  ;;  %2645 = vmatmul.mubr.bf16.vlgmr.msra.gmra.mrb[16].mxu0 %v4767_v36 }
 0x361   :  { %3691 = vmatpush3.bf16.msra.mxu0 %v2716_v52  ;;  %v2732_v52 = vrot.slane %v4767_v36, 2 }
 0x362   :  { %3692 = vmatprep.subr.bf16.mxu0 %v2725_v35  ;;  %v2838_v35 = vld [vmem:[#allocation3 + $0x600] sm:$0xff] }
 0x363   :  { %3539 = vmatpush3.bf16.msra.mxu1 %v2292_v31  ;;  %v2353_v31 = vld [vmem:[#allocation3 + $0x208] sm:$0xff] }
 0x364   :  { %3540 = vmatprep.subr.bf16.mxu1 %v2301_v47  ;;  %v2362_v47 = vld [vmem:[#allocation3 + $0x250] sm:$0xff] }
 0x365   :  { %3693 = vmatpush3.bf16.msra.mxu0 %v2717_v48  ;;  %v2847_v48 = vld [vmem:[#allocation3 + $0x648] sm:$0xff] }
 0x366   :  { %3694 = vmatprep.subr.bf16.mxu0 %v2726_v45  ;;  %v2839_v45 = vld [vmem:[#allocation3 + $0x608] sm:$0xff] }
 0x367   :  { %3541 = vmatpush3.bf16.msra.mxu1 %v2293_v32  ;;  %v2354_v32 = vld [vmem:[#allocation3 + $0x210] sm:$0xff] }
 0x368   :  { %3542 = vmatprep.subr.bf16.mxu1 %v2302_v26  ;;  %v2363_v26 = vld [vmem:[#allocation3 + $0x258] sm:$0xff] }
 0x369   :  { %3695 = vmatpush3.bf16.msra.mxu0 %v2718_v55  ;;  %v2848_v55 = vld [vmem:[#allocation3 + $0x650] sm:$0xff] }
 0x36a   :  { %3696 = vmatprep.subr.bf16.mxu0 %v2727_v57  ;;  %v2840_v57 = vld [vmem:[#allocation3 + $0x610] sm:$0xff] }
 0x36b   :  { %3543 = vmatpush3.bf16.msra.mxu1 %v2294_v56  ;;  %v2355_v56 = vld [vmem:[#allocation3 + $0x218] sm:$0xff] }
 0x36c   :  { %3544 = vmatprep.subr.bf16.mxu1 %v2303_v51  ;;  %v2364_v51 = vld [vmem:[#allocation3 + $0x260] sm:$0xff] }
 0x36d   :  { %3697 = vmatpush3.bf16.msra.mxu0 %v2719_v58  ;;  %v2849_v58 = vld [vmem:[#allocation3 + $0x658] sm:$0xff] }
 0x36e   :  { %3698 = vmatprep.subr.bf16.mxu0 %v2728_v43  ;;  %v2841_v43 = vld [vmem:[#allocation3 + $0x618] sm:$0xff] }
 0x36f   :  { %3545 = vmatpush3.bf16.msra.mxu1 %v2295_v59  ;;  %v2356_v59 = vld [vmem:[#allocation3 + $0x220] sm:$0xff] }
 0x370   :  { %3546 = vmatprep.subr.bf16.mxu1 %v2304_v30  ;;  %v2365_v30 = vld [vmem:[#allocation3 + $0x268] sm:$0xff] }
 0x371   :  { %3699 = vmatpush3.bf16.msra.mxu0 %v2720_v34  ;;  %v2850_v34 = vld [vmem:[#allocation3 + $0x660] sm:$0xff] }
 0x372   :  { %3700 = vmatprep.subr.bf16.mxu0 %v2729_v33  ;;  %v2842_v33 = vld [vmem:[#allocation3 + $0x620] sm:$0xff] }
 0x373   :  { %3547 = vmatpush3.bf16.msra.mxu1 %v2296_v27  ;;  %v2357_v27 = vld [vmem:[#allocation3 + $0x228] sm:$0xff] }
 0x374   :  { %3548 = vmatprep.subr.bf16.mxu1 %v2305_v60  ;;  %v2366_v60 = vld [vmem:[#allocation3 + $0x270] sm:$0xff] }
 0x375   :  { %3701 = vmatpush3.bf16.msra.mxu0 %v2721_v61  ;;  %v2851_v61 = vld [vmem:[#allocation3 + $0x668] sm:$0xff] }
 0x376   :  { %3702 = vmatprep.subr.bf16.mxu0 %v2730_v63  ;;  %v2843_v63 = vld [vmem:[#allocation3 + $0x628] sm:$0xff] }
 0x377   :  { %3549 = vmatpush3.bf16.msra.mxu1 %v2297_v62  ;;  %v2358_v62 = vld [vmem:[#allocation3 + $0x230] sm:$0xff] }
 0x378   :  { %3550 = vmatprep.subr.bf16.mxu1 %v2306_v24  ;;  %v2367_v24 = vld [vmem:[#allocation3 + $0x278] sm:$0xff] }
 0x379   :  { %3703 = vmatpush3.bf16.msra.mxu0 %v2722_v28  ;;  %v2852_v28 = vld [vmem:[#allocation3 + $0x670] sm:$0xff] }
 0x37a   :  { %3704 = vmatprep.subr.bf16.mxu0 %v2731_v46  ;;  %v2844_v46 = vld [vmem:[#allocation3 + $0x630] sm:$0xff] }
 0x37b   :  { %3551 = vmatpush3.bf16.msra.mxu1 %v2298_v25  ;;  %v2359_v25 = vld [vmem:[#allocation3 + $0x238] sm:$0xff] }
 0x37c   :  { %3558 = vmatprep.subr.bf16.mxu1 %v2360_v53  ;;  %v2421_v53 = vld [vmem:[#allocation3 + $0x2c0] sm:$0xff] }
 0x37d   :  { %3705 = vmatpush3.bf16.msra.mxu0 %v2723_v29  ;;  %v2853_v29 = vld [vmem:[#allocation3 + $0x678] sm:$0xff] }
 0x37e   :  { %2344 = vmatmul.mubr.bf16.vlgmr.msra.gmra.mrb[24].mxu1 %v2307_v54  ;;  %v2368_v54 = vrot.slane %v4763_v40, 4 }
 0x37f   :  { %3559 = vmatpush3.bf16.msra.mxu1 %v2352_v39  ;;  %2404 = vmatprep.mubr.bf16.mxu1 %v2369_v44  ;;  %v2430_v44 = vrot.slane %v4765_v41, 5  ;;  %v2733_v39 = vrot.slane %v4769_v37, 2 }
 0x380   :  { %3560 = vmatprep.subr.bf16.mxu1 %v2361_v49  ;;  %v2846_v49 = vld [vmem:[#allocation3 + $0x640] sm:$0xff] }
 0x381   :  { %2768 = vmatprep.mubr.bf16.mxu0 %v2733_v39  ;;  %3734 = vmatprep.subr.bf16.mxu0 %v2846_v49  ;;  %v2429_v39 = vrot.slane %v4763_v40, 5  ;;  %v2855_v49 = vrot.slane %v4769_v37, 4 }
 0x382   :  { %2769 = vmatmul.mubr.bf16.vlgmr.msra.gmra.mrb[20].mxu0 %v2732_v52  ;;  %v2474_v52 = vld [vmem:[#allocation3 + $0x300] sm:$0xff] }
 0x383   :  { %3561 = vmatpush3.bf16.msra.mxu1 %v2353_v31  ;;  %v2422_v31 = vld [vmem:[#allocation3 + $0x2c8] sm:$0xff]  ;;  %3735 = vmatpush3.bf16.msra.mxu0 %v2838_v35  ;;  %v2854_v35 = vrot.slane %v4767_v36, 4 }
 0x384   :  { %3562 = vmatprep.subr.bf16.mxu1 %v2362_v47  ;;  %v2414_v47 = vld [vmem:[#allocation3 + $0x288] sm:$0xff]  ;;  %3736 = vmatprep.subr.bf16.mxu0 %v2847_v48  ;;  %v2960_v48 = vld [vmem:[#allocation3 + $0x700] sm:$0xff] }
 0x385   :  { %2890 = vmatprep.mubr.bf16.mxu0 %v2855_v49  ;;  %v2967_v49 = vld [vmem:[#allocation3 + $0x738] sm:$0xff] }
 0x387   :  { %3563 = vmatpush3.bf16.msra.mxu1 %v2354_v32  ;;  %v2423_v32 = vld [vmem:[#allocation3 + $0x2d0] sm:$0xff]  ;;  %3737 = vmatpush3.bf16.msra.mxu0 %v2839_v45  ;;  %v2969_v45 = vld [vmem:[#allocation3 + $0x748] sm:$0xff] }
 0x388   :  { %3564 = vmatprep.subr.bf16.mxu1 %v2363_v26  ;;  %v2415_v26 = vld [vmem:[#allocation3 + $0x290] sm:$0xff]  ;;  %3738 = vmatprep.subr.bf16.mxu0 %v2848_v55  ;;  %v2961_v55 = vld [vmem:[#allocation3 + $0x708] sm:$0xff] }
 0x38b   :  { %3565 = vmatpush3.bf16.msra.mxu1 %v2355_v56  ;;  %v2424_v56 = vld [vmem:[#allocation3 + $0x2d8] sm:$0xff]  ;;  %3739 = vmatpush3.bf16.msra.mxu0 %v2840_v57  ;;  %v2970_v57 = vld [vmem:[#allocation3 + $0x750] sm:$0xff] }
 0x38c   :  { %3566 = vmatprep.subr.bf16.mxu1 %v2364_v51  ;;  %v2416_v51 = vld [vmem:[#allocation3 + $0x298] sm:$0xff]  ;;  %3740 = vmatprep.subr.bf16.mxu0 %v2849_v58  ;;  %v2962_v58 = vld [vmem:[#allocation3 + $0x710] sm:$0xff] }
 0x38f   :  { %3567 = vmatpush3.bf16.msra.mxu1 %v2356_v59  ;;  %v2425_v59 = vld [vmem:[#allocation3 + $0x2e0] sm:$0xff]  ;;  %3741 = vmatpush3.bf16.msra.mxu0 %v2841_v43  ;;  %v2971_v43 = vld [vmem:[#allocation3 + $0x758] sm:$0xff] }
 0x390   :  { %3568 = vmatprep.subr.bf16.mxu1 %v2365_v30  ;;  %v2417_v30 = vld [vmem:[#allocation3 + $0x2a0] sm:$0xff]  ;;  %3742 = vmatprep.subr.bf16.mxu0 %v2850_v34  ;;  %v2963_v34 = vld [vmem:[#allocation3 + $0x718] sm:$0xff] }
 0x393   :  { %3569 = vmatpush3.bf16.msra.mxu1 %v2357_v27  ;;  %v2426_v27 = vld [vmem:[#allocation3 + $0x2e8] sm:$0xff]  ;;  %3743 = vmatpush3.bf16.msra.mxu0 %v2842_v33  ;;  %v2972_v33 = vld [vmem:[#allocation3 + $0x760] sm:$0xff] }
 0x394   :  { %3570 = vmatprep.subr.bf16.mxu1 %v2366_v60  ;;  %v2418_v60 = vld [vmem:[#allocation3 + $0x2a8] sm:$0xff]  ;;  %3744 = vmatprep.subr.bf16.mxu0 %v2851_v61  ;;  %v2964_v61 = vld [vmem:[#allocation3 + $0x720] sm:$0xff] }
 0x397   :  { %3571 = vmatpush3.bf16.msra.mxu1 %v2358_v62  ;;  %v2427_v62 = vld [vmem:[#allocation3 + $0x2f0] sm:$0xff]  ;;  %3745 = vmatpush3.bf16.msra.mxu0 %v2843_v63  ;;  %v2973_v63 = vld [vmem:[#allocation3 + $0x768] sm:$0xff] }
 0x398   :  { %3572 = vmatprep.subr.bf16.mxu1 %v2367_v24  ;;  %v2419_v24 = vld [vmem:[#allocation3 + $0x2b0] sm:$0xff]  ;;  %3746 = vmatprep.subr.bf16.mxu0 %v2852_v28  ;;  %v2965_v28 = vld [vmem:[#allocation3 + $0x728] sm:$0xff] }
 0x39b   :  { %3573 = vmatpush3.bf16.msra.mxu1 %v2359_v25  ;;  %v2428_v25 = vld [vmem:[#allocation3 + $0x2f8] sm:$0xff]  ;;  %3747 = vmatpush3.bf16.msra.mxu0 %v2844_v46  ;;  %v2974_v46 = vld [vmem:[#allocation3 + $0x770] sm:$0xff] }
 0x39c   :  { %3580 = vmatprep.subr.bf16.mxu1 %v2421_v53  ;;  %v2420_v53 = vld [vmem:[#allocation3 + $0x2b8] sm:$0xff]  ;;  %3748 = vmatprep.subr.bf16.mxu0 %v2853_v29  ;;  %v2966_v29 = vld [vmem:[#allocation3 + $0x730] sm:$0xff] }
 0x39e   :  { %2405 = vmatmul.mubr.bf16.vlgmr.msra.gmra.mrb[28].mxu1 %v2368_v54  ;;  %v2482_v54 = vld [vmem:[#allocation3 + $0x340] sm:$0xff] }
 0x39f   :  { %3581 = vmatpush3.bf16.msra.mxu1 %v2413_v42  ;;  %2465 = vmatprep.mubr.bf16.mxu1 %v2430_v44  ;;  %v2845_v44 = vld [vmem:[#allocation3 + $0x638] sm:$0xff]  ;;  %v2491_v42 = vrot.slane %v4765_v41, 6 }
 0x3a0   :  { %3582 = vmatprep.subr.bf16.mxu1 %v2422_v31  ;;  %3749 = vmatpush3.bf16.msra.mxu0 %v2845_v44  ;;  %v2968_v31 = vld [vmem:[#allocation3 + $0x740] sm:$0xff]  ;;  %v2975_v44 = vld [vmem:[#allocation3 + $0x778] sm:$0xff] }
 0x3a1   :  { %3778 = vmatprep.subr.bf16.mxu0 %v2968_v31  ;;  %v2552_v31 = vrot.slane %v4765_v41, 7  ;;  %v2538_v41 = vld [vmem:[#allocation3 + $0x398] sm:$0xff] }
 0x3a3   :  { %3583 = vmatpush3.bf16.msra.mxu1 %v2414_v47  ;;  %v2483_v47 = vld [vmem:[#allocation3 + $0x348] sm:$0xff]  ;;  %2891 = vmatmul.mubr.bf16.vlgmr.msra.gmra.mrb[24].mxu0 %v2854_v35  ;;  %v2535_v35 = vld [vmem:[#allocation3 + $0x380] sm:$0xff] }
 0x3a4   :  { %3584 = vmatprep.subr.bf16.mxu1 %v2423_v32  ;;  %v2475_v32 = vld [vmem:[#allocation3 + $0x308] sm:$0xff]  ;;  %3779 = vmatpush3.bf16.msra.mxu0 %v2960_v48 }
 0x3a5   :  { %3780 = vmatprep.subr.bf16.mxu0 %v2969_v45  ;;  %v2544_v48 = vld [vmem:[#allocation3 + $0x3c8] sm:$0xff]  ;;  %v2545_v45 = vld [vmem:[#allocation3 + $0x3d0] sm:$0xff] }
 0x3a7   :  { %3585 = vmatpush3.bf16.msra.mxu1 %v2415_v26  ;;  %v2484_v26 = vld [vmem:[#allocation3 + $0x350] sm:$0xff] }
 0x3a8   :  { %3586 = vmatprep.subr.bf16.mxu1 %v2424_v56  ;;  %v2476_v56 = vld [vmem:[#allocation3 + $0x310] sm:$0xff]  ;;  %3781 = vmatpush3.bf16.msra.mxu0 %v2961_v55  ;;  %v2546_v55 = vld [vmem:[#allocation3 + $0x3d8] sm:$0xff] }
 0x3a9   :  { %3782 = vmatprep.subr.bf16.mxu0 %v2970_v57  ;;  %v2547_v57 = vld [vmem:[#allocation3 + $0x3e0] sm:$0xff] }
 0x3ab   :  { %3587 = vmatpush3.bf16.msra.mxu1 %v2416_v51  ;;  %v2485_v51 = vld [vmem:[#allocation3 + $0x358] sm:$0xff] }
 0x3ac   :  { %3588 = vmatprep.subr.bf16.mxu1 %v2425_v59  ;;  %v2477_v59 = vld [vmem:[#allocation3 + $0x318] sm:$0xff]  ;;  %3783 = vmatpush3.bf16.msra.mxu0 %v2962_v58 }
 0x3ad   :  { %3784 = vmatprep.subr.bf16.mxu0 %v2971_v43 }
 0x3af   :  { %3589 = vmatpush3.bf16.msra.mxu1 %v2417_v30  ;;  %v2486_v30 = vld [vmem:[#allocation3 + $0x360] sm:$0xff] }
 0x3b0   :  { %3590 = vmatprep.subr.bf16.mxu1 %v2426_v27  ;;  %v2478_v27 = vld [vmem:[#allocation3 + $0x320] sm:$0xff]  ;;  %3785 = vmatpush3.bf16.msra.mxu0 %v2963_v34  ;;  %v2548_v34 = vld [vmem:[#allocation3 + $0x3e8] sm:$0xff] }
 0x3b1   :  { %3786 = vmatprep.subr.bf16.mxu0 %v2972_v33 }
 0x3b3   :  { %3591 = vmatpush3.bf16.msra.mxu1 %v2418_v60  ;;  %v2487_v60 = vld [vmem:[#allocation3 + $0x368] sm:$0xff] }
 0x3b4   :  { %3592 = vmatprep.subr.bf16.mxu1 %v2427_v62  ;;  %v2479_v62 = vld [vmem:[#allocation3 + $0x328] sm:$0xff]  ;;  %3787 = vmatpush3.bf16.msra.mxu0 %v2964_v61 }
 0x3b5   :  { %3788 = vmatprep.subr.bf16.mxu0 %v2973_v63 }
 0x3b7   :  { %3593 = vmatpush3.bf16.msra.mxu1 %v2419_v24  ;;  %v2488_v24 = vld [vmem:[#allocation3 + $0x370] sm:$0xff] }
 0x3b8   :  { %3594 = vmatprep.subr.bf16.mxu1 %v2428_v25  ;;  %v2480_v25 = vld [vmem:[#allocation3 + $0x330] sm:$0xff]  ;;  %3789 = vmatpush3.bf16.msra.mxu0 %v2965_v28 }
 0x3b9   :  { %3790 = vmatprep.subr.bf16.mxu0 %v2974_v46  ;;  %v2541_v28 = vld [vmem:[#allocation3 + $0x3b0] sm:$0xff]  ;;  %v2542_v46 = vld [vmem:[#allocation3 + $0x3b8] sm:$0xff] }
 0x3bb   :  { %3595 = vmatpush3.bf16.msra.mxu1 %v2420_v53  ;;  %v2489_v53 = vld [vmem:[#allocation3 + $0x378] sm:$0xff] }
 0x3bc   :  { %3602 = vmatprep.subr.bf16.mxu1 %v2482_v54  ;;  %v2481_v54 = vld [vmem:[#allocation3 + $0x338] sm:$0xff]  ;;  %3791 = vmatpush3.bf16.msra.mxu0 %v2966_v29  ;;  %v2551_v29 = vrot.slane %v4763_v40, 7 }
 0x3bd   :  { %3792 = vmatprep.subr.bf16.mxu0 %v2975_v44  ;;  %v2653_v44 = vld [vmem:[#allocation3 + $0x480] sm:$0xff] }
 0x3be   :  { %2466 = vmatmul.mubr.bf16.vlgmr.msra.gmra.mrb[32].mxu1 %v2429_v39  ;;  %v2543_v39 = vld [vmem:[#allocation3 + $0x3c0] sm:$0xff] }
 0x3bf   :  { %3603 = vmatpush3.bf16.msra.mxu1 %v2474_v52  ;;  %2526 = vmatprep.mubr.bf16.mxu1 %v2491_v42  ;;  %v2490_v42 = vrot.slane %v4763_v40, 6  ;;  %v2977_v52 = vrot.slane %v4769_v37, 6  ;;  %v2665_v40 = vld [vmem:[#allocation3 + $0x4e0] sm:$0xff] }
 0x3c0   :  { %3604 = vmatprep.subr.bf16.mxu1 %v2483_v47  ;;  %v2976_v47 = vrot.slane %v4767_v36, 6  ;;  %3793 = vmatpush3.bf16.msra.mxu0 %v2967_v49  ;;  %v2663_v49 = vld [vmem:[#allocation3 + $0x4d0] sm:$0xff] }
 0x3c1   :  { %3012 = vmatprep.mubr.bf16.mxu0 %v2977_v52  ;;  %v2655_v52 = vld [vmem:[#allocation3 + $0x490] sm:$0xff] }
 0x3c3   :  { %3605 = vmatpush3.bf16.msra.mxu1 %v2475_v32  ;;  %v2536_v32 = vld [vmem:[#allocation3 + $0x388] sm:$0xff]  ;;  %3013 = vmatmul.mubr.bf16.vlgmr.msra.gmra.mrb[28].mxu0 %v2976_v47  ;;  %v2657_v47 = vld [vmem:[#allocation3 + $0x4a0] sm:$0xff] }
 0x3c4   :  { %3606 = vmatprep.subr.bf16.mxu1 %v2484_v26  ;;  %v2537_v26 = vld [vmem:[#allocation3 + $0x390] sm:$0xff] }
 0x3c7   :  { %3607 = vmatpush3.bf16.msra.mxu1 %v2476_v56 }
 0x3c8   :  { %3608 = vmatprep.subr.bf16.mxu1 %v2485_v51 }
 0x3cb   :  { %3609 = vmatpush3.bf16.msra.mxu1 %v2477_v59 }
 0x3cc   :  { %3610 = vmatprep.subr.bf16.mxu1 %v2486_v30  ;;  %v2539_v30 = vld [vmem:[#allocation3 + $0x3a0] sm:$0xff] }
 0x3cf   :  { %3611 = vmatpush3.bf16.msra.mxu1 %v2478_v27  ;;  %v2540_v27 = vld [vmem:[#allocation3 + $0x3a8] sm:$0xff] }
 0x3d0   :  { %3612 = vmatprep.subr.bf16.mxu1 %v2487_v60  ;;  %v2549_v60 = vld [vmem:[#allocation3 + $0x3f0] sm:$0xff] }
 0x3d3   :  { %3613 = vmatpush3.bf16.msra.mxu1 %v2479_v62 }
 0x3d4   :  { %3614 = vmatprep.subr.bf16.mxu1 %v2488_v24 }
 0x3d7   :  { %3615 = vmatpush3.bf16.msra.mxu1 %v2480_v25  ;;  %v2550_v25 = vld [vmem:[#allocation3 + $0x3f8] sm:$0xff] }
 0x3d8   :  { %3616 = vmatprep.subr.bf16.mxu1 %v2489_v53  ;;  %v2661_v53 = vld [vmem:[#allocation3 + $0x4c0] sm:$0xff] }
 0x3db   :  { %3617 = vmatpush3.bf16.msra.mxu1 %v2481_v54  ;;  %v2672_v54 = vrot.slane %v4769_v37, 1 }
 0x3dc   :  { %3624 = vmatprep.subr.bf16.mxu1 %v2543_v39  ;;  %v2662_v39 = vld [vmem:[#allocation3 + $0x4c8] sm:$0xff] }
 0x3de   :  { %2527 = vmatmul.mubr.bf16.vlgmr.msra.gmra.mrb[36].mxu1 %v2490_v42  ;;  %v2654_v42 = vld [vmem:[#allocation3 + $0x488] sm:$0xff] }
 0x3df   :  { %3625 = vmatpush3.bf16.msra.mxu1 %v2535_v35  ;;  %2587 = vmatprep.mubr.bf16.mxu1 %v2552_v31  ;;  %v2664_v31 = vld [vmem:[#allocation3 + $0x4d8] sm:$0xff] }
 0x3e0   :  { %3626 = vmatprep.subr.bf16.mxu1 %v2544_v48  ;;  %v2656_v35 = vld [vmem:[#allocation3 + $0x498] sm:$0xff]  ;;  %v2666_v48 = vld [vmem:[#allocation3 + $0x4e8] sm:$0xff] }
 0x3e3   :  { %3627 = vmatpush3.bf16.msra.mxu1 %v2536_v32  ;;  %v2658_v32 = vld [vmem:[#allocation3 + $0x4a8] sm:$0xff] }
 0x3e4   :  { %3628 = vmatprep.subr.bf16.mxu1 %v2545_v45 }
 0x3e7   :  { %3629 = vmatpush3.bf16.msra.mxu1 %v2537_v26  ;;  %v2667_v26 = vld [vmem:[#allocation3 + $0x4f0] sm:$0xff] }
 0x3e8   :  { %3630 = vmatprep.subr.bf16.mxu1 %v2546_v55 }
 0x3e9   :  { %v3484_v56 = vpop.f32.mrb[8].mxu1 }
 0x3ea   :  { %v3485_v51 = vpop.f32.mrb[9].mxu1 }
 0x3eb   :  { %v3486_v58 = vadd.f32 %v3485_v51, %v3484_v56  ;;  %3631 = vmatpush3.bf16.msra.mxu1 %v2538_v41  ;;  %v3487_v59 = vpop.f32.mrb[10].mxu1  ;;  %v2659_v51 = vld [vmem:[#allocation3 + $0x4b0] sm:$0xff] }
 0x3ec   :  { %v3488_v43 = vpop.f32.mrb[11].mxu1  ;;  %3632 = vmatprep.subr.bf16.mxu1 %v2547_v57  ;;  %v2668_v59 = vld [vmem:[#allocation3 + $0x4f8] sm:$0xff] }
 0x3ed   :  { %v2660_v43 = vld [vmem:[#allocation3 + $0x4b8] sm:$0xff] }
 0x3ef   :  { %3633 = vmatpush3.bf16.msra.mxu1 %v2539_v30  ;;  %v2785_v30 = vld [vmem:[#allocation3 + $0x5c0] sm:$0xff] }
 0x3f0   :  { %3634 = vmatprep.subr.bf16.mxu1 %v2548_v34  ;;  %v2671_v34 = vrot.slane %v4767_v36, 1 }
 0x3f1   :  { %v2161_v33 = vpop.f32.mrb[12].mxu1 }
 0x3f2   :  { %v2162_v61 = vadd.f32 %v3486_v58, %v2161_v33  ;;  %v3813_v62 = vpop.f32.mrb[13].mxu1  ;;  %v2777_v33 = vld [vmem:[#allocation3 + $0x580] sm:$0xff] }
 0x3f3   :  { %3635 = vmatpush3.bf16.msra.mxu1 %v2540_v27  ;;  %v2164_v63 = vpop.f32.mrb[14].mxu1  ;;  %v2794_v27 = vrot.slane %v4769_v37, 3  ;;  %v2778_v62 = vld [vmem:[#allocation3 + $0x588] sm:$0xff] }
 0x3f4   :  { %v3814_v24 = vpop.f32.mrb[15].mxu1  ;;  %3636 = vmatprep.subr.bf16.mxu1 %v2549_v60  ;;  %v2786_v60 = vld [vmem:[#allocation3 + $0x5c8] sm:$0xff]  ;;  %v2787_v63 = vld [vmem:[#allocation3 + $0x5d0] sm:$0xff] }
 0x3f5   :  { %v2788_v24 = vld [vmem:[#allocation3 + $0x5d8] sm:$0xff] }
 0x3f7   :  { %3637 = vmatpush3.bf16.msra.mxu1 %v2541_v28  ;;  %v2780_v28 = vld [vmem:[#allocation3 + $0x598] sm:$0xff] }
 0x3f8   :  { %3638 = vmatprep.subr.bf16.mxu1 %v2550_v25  ;;  %v2789_v25 = vld [vmem:[#allocation3 + $0x5e0] sm:$0xff] }
 0x3fb   :  { %3639 = vmatpush3.bf16.msra.mxu1 %v2542_v46  ;;  %v2781_v46 = vld [vmem:[#allocation3 + $0x5a0] sm:$0xff] }
 0x3fc   :  { %3668 = vmatprep.subr.bf16.mxu1 %v2661_v53  ;;  %v2790_v53 = vld [vmem:[#allocation3 + $0x5e8] sm:$0xff] }
 0x3fe   :  { %2588 = vmatmul.mubr.bf16.vlgmr.msra.gmra.mrb[40].mxu1 %v2551_v29  ;;  %v2782_v29 = vld [vmem:[#allocation3 + $0x5a8] sm:$0xff] }
 0x3ff   :  { %3669 = vmatpush3.bf16.msra.mxu1 %v2653_v44  ;;  %2707 = vmatprep.mubr.bf16.mxu1 %v2672_v54  ;;  %v2791_v44 = vld [vmem:[#allocation3 + $0x5f0] sm:$0xff] }
 0x400   :  { %3670 = vmatprep.subr.bf16.mxu1 %v2662_v39 }
 0x403   :  { %3671 = vmatpush3.bf16.msra.mxu1 %v2654_v42 }
 0x404   :  { %3672 = vmatprep.subr.bf16.mxu1 %v2663_v49 }
 0x407   :  { %3673 = vmatpush3.bf16.msra.mxu1 %v2655_v52 }
 0x408   :  { %3674 = vmatprep.subr.bf16.mxu1 %v2664_v31  ;;  %v2783_v31 = vld [vmem:[#allocation3 + $0x5b0] sm:$0xff] }
 0x40b   :  { %3675 = vmatpush3.bf16.msra.mxu1 %v2656_v35 }
 0x40c   :  { %3676 = vmatprep.subr.bf16.mxu1 %v2665_v40  ;;  %v2792_v40 = vld [vmem:[#allocation3 + $0x5f8] sm:$0xff] }
 0x40f   :  { %3677 = vmatpush3.bf16.msra.mxu1 %v2657_v47  ;;  %v2784_v47 = vld [vmem:[#allocation3 + $0x5b8] sm:$0xff] }
 0x410   :  { %3678 = vmatprep.subr.bf16.mxu1 %v2666_v48  ;;  %v2907_v48 = vld [vmem:[#allocation3 + $0x6c0] sm:$0xff] }
 0x411   :  { %v3508_v45 = vpop.f32.mrb[16].mxu1 }
 0x412   :  { %v3509_v55 = vpop.f32.mrb[17].mxu1 }
 0x413   :  { %v3510_v41 = vadd.f32 %v3509_v55, %v3508_v45  ;;  %v3511_v56 = vpop.f32.mrb[18].mxu1  ;;  %3679 = vmatpush3.bf16.msra.mxu1 %v2658_v32  ;;  %v2793_v32 = vrot.slane %v4767_v36, 3  ;;  %v2916_v45 = vrot.slane %v4769_v37, 5  ;;  %v2908_v55 = vld [vmem:[#allocation3 + $0x6c8] sm:$0xff]  ;;  %v2903_v37 = vld [vmem:[#allocation3 + $0x6a0] sm:$0xff] }
 0x414   :  { %v3512_v57 = vpop.f32.mrb[19].mxu1  ;;  %3680 = vmatprep.subr.bf16.mxu1 %v2667_v26  ;;  %v2899_v26 = vld [vmem:[#allocation3 + $0x680] sm:$0xff]  ;;  %v2909_v56 = vld [vmem:[#allocation3 + $0x6d0] sm:$0xff] }
 0x415   :  { %v2229_v58 = vadd.f32 %v3510_v41, %v2162_v61  ;;  %v2779_v61 = vld [vmem:[#allocation3 + $0x590] sm:$0xff]  ;;  %v2900_v41 = vld [vmem:[#allocation3 + $0x688] sm:$0xff] }
 0x416   :  { %v2901_v57 = vld [vmem:[#allocation3 + $0x690] sm:$0xff] }
 0x417   :  { %3681 = vmatpush3.bf16.msra.mxu1 %v2659_v51  ;;  %v2910_v51 = vld [vmem:[#allocation3 + $0x6d8] sm:$0xff] }
 0x418   :  { %3682 = vmatprep.subr.bf16.mxu1 %v2668_v59  ;;  %v2911_v59 = vld [vmem:[#allocation3 + $0x6e0] sm:$0xff] }
 0x41b   :  { %3683 = vmatpush3.bf16.msra.mxu1 %v2660_v43  ;;  %v2912_v43 = vld [vmem:[#allocation3 + $0x6e8] sm:$0xff] }
 0x41c   :  { %3712 = vmatprep.subr.bf16.mxu1 %v2785_v30  ;;  %v2904_v30 = vld [vmem:[#allocation3 + $0x6a8] sm:$0xff] }
 0x41e   :  { %2708 = vmatmul.mubr.bf16.vlgmr.msra.gmra.mrb[44].mxu1 %v2671_v34 }
 0x41f   :  { %3713 = vmatpush3.bf16.msra.mxu1 %v2777_v33  ;;  %2829 = vmatprep.mubr.bf16.mxu1 %v2794_v27  ;;  %v2913_v27 = vld [vmem:[#allocation3 + $0x6f0] sm:$0xff] }
 0x420   :  { %3714 = vmatprep.subr.bf16.mxu1 %v2786_v60 }
 0x423   :  { %3715 = vmatpush3.bf16.msra.mxu1 %v2778_v62 }
 0x424   :  { %3716 = vmatprep.subr.bf16.mxu1 %v2787_v63 }
 0x427   :  { %3717 = vmatpush3.bf16.msra.mxu1 %v2779_v61 }
 0x428   :  { %3718 = vmatprep.subr.bf16.mxu1 %v2788_v24 }
 0x42b   :  { %3719 = vmatpush3.bf16.msra.mxu1 %v2780_v28 }
 0x42c   :  { %3720 = vmatprep.subr.bf16.mxu1 %v2789_v25  ;;  %v2905_v25 = vld [vmem:[#allocation3 + $0x6b0] sm:$0xff] }
 0x42f   :  { %3721 = vmatpush3.bf16.msra.mxu1 %v2781_v46 }
 0x430   :  { %3722 = vmatprep.subr.bf16.mxu1 %v2790_v53 }
 0x431   :  { %v3530_v54 = vpop.f32.mrb[20].mxu1 }
 0x432   :  { %v3531_v39 = vpop.f32.mrb[21].mxu1 }
 0x433   :  { %v3532_v42 = vadd.f32 %v3531_v39, %v3530_v54  ;;  %v3533_v49 = vpop.f32.mrb[22].mxu1  ;;  %3723 = vmatpush3.bf16.msra.mxu1 %v2782_v29  ;;  %v3662_v33 = vpop.f32.mrb[16].mxu0  ;;  %v2914_v29 = vld [vmem:[#allocation3 + $0x6f8] sm:$0xff]  ;;  %v2915_v39 = vrot.slane %v4767_v36, 5 }
 0x434   :  { %v3534_v52 = vpop.f32.mrb[23].mxu1  ;;  %3724 = vmatprep.subr.bf16.mxu1 %v2791_v44  ;;  %v3663_v62 = vpop.f32.mrb[17].mxu0  ;;  %v2906_v44 = vld [vmem:[#allocation3 + $0x6b8] sm:$0xff] }
 0x435   :  { %v2290_v35 = vadd.f32 %v3532_v42, %v2229_v58  ;;  %v2902_v58 = vld [vmem:[#allocation3 + $0x698] sm:$0xff]  ;;  %v3665_v24 = vpop.f32.mrb[18].mxu0  ;;  %v3664_v54 = vadd.f32 %v3663_v62, %v3662_v33 }
 0x436   :  { %v3666_v46 = vpop.f32.mrb[19].mxu0 }
 0x437   :  { %3725 = vmatpush3.bf16.msra.mxu1 %v2783_v31 }
 0x438   :  { %3726 = vmatprep.subr.bf16.mxu1 %v2792_v40 }
 0x43b   :  { %3727 = vmatpush3.bf16.msra.mxu1 %v2784_v47 }
 0x43c   :  { %3756 = vmatprep.subr.bf16.mxu1 %v2907_v48 }
 0x43e   :  { %2830 = vmatmul.mubr.bf16.vlgmr.msra.gmra.mrb[48].mxu1 %v2793_v32 }
 0x43f   :  { %3757 = vmatpush3.bf16.msra.mxu1 %v2899_v26  ;;  %2951 = vmatprep.mubr.bf16.mxu1 %v2916_v45 }
 0x440   :  { %3758 = vmatprep.subr.bf16.mxu1 %v2908_v55 }
 0x443   :  { %3759 = vmatpush3.bf16.msra.mxu1 %v2900_v41 }
 0x444   :  { %3760 = vmatprep.subr.bf16.mxu1 %v2909_v56 }
 0x447   :  { %3761 = vmatpush3.bf16.msra.mxu1 %v2901_v57 }
 0x448   :  { %3762 = vmatprep.subr.bf16.mxu1 %v2910_v51 }
 0x44b   :  { %3763 = vmatpush3.bf16.msra.mxu1 %v2902_v58 }
 0x44c   :  { %3764 = vmatprep.subr.bf16.mxu1 %v2911_v59 }
 0x44f   :  { %3765 = vmatpush3.bf16.msra.mxu1 %v2903_v37 }
 0x450   :  { %3766 = vmatprep.subr.bf16.mxu1 %v2912_v43 }
 0x451   :  { %v3552_v34 = vpop.f32.mrb[24].mxu1 }
 0x452   :  { %v3553_v60 = vpop.f32.mrb[25].mxu1 }
 0x453   :  { %v3554_v63 = vadd.f32 %v3553_v60, %v3552_v34  ;;  %v3555_v61 = vpop.f32.mrb[26].mxu1  ;;  %3767 = vmatpush3.bf16.msra.mxu1 %v2904_v30 }
 0x454   :  { %v3556_v28 = vpop.f32.mrb[27].mxu1  ;;  %3768 = vmatprep.subr.bf16.mxu1 %v2913_v27 }
 0x455   :  { %v2351_v53 = vadd.f32 %v3554_v63, %v2290_v35  ;;  %v3706_v49 = vpop.f32.mrb[20].mxu0 }
 0x456   :  { %v3707_v31 = vpop.f32.mrb[21].mxu0 }
 0x457   :  { %3769 = vmatpush3.bf16.msra.mxu1 %v2905_v25  ;;  %v3709_v48 = vpop.f32.mrb[22].mxu0  ;;  %v3708_v35 = vadd.f32 %v3707_v31, %v3706_v49 }
 0x458   :  { %3770 = vmatprep.subr.bf16.mxu1 %v2914_v29  ;;  %v3710_v45 = vpop.f32.mrb[23].mxu0 }
 0x45b   :  { %3771 = vmatpush3.bf16.msra.mxu1 %v2906_v44 }
 0x45c   :  { %3815 = vmatprep.subr.bf16.mxu1 %v4248_v38 }
 0x45e   :  { %2952 = vmatmul.mubr.bf16.vlgmr.msra.gmra.mrb[52].mxu1 %v2915_v39 }
 0x45f   :  { %3831 = vmatprep.mubr.msk.bf16.mxu1 %vm4249_vm5, %v4248_v38 }
 0x471   :  { %v3574_v42 = vpop.f32.mrb[28].mxu1 }
 0x472   :  { %v3575_v52 = vpop.f32.mrb[29].mxu1 }
 0x473   :  { %v3576_v40 = vadd.f32 %v3575_v52, %v3574_v42  ;;  %v3577_v47 = vpop.f32.mrb[30].mxu1 }
 0x474   :  { %v3578_v32 = vpop.f32.mrb[31].mxu1 }
 0x475   :  { %v2412_v26 = vadd.f32 %v3576_v40, %v2351_v53 }
 0x476   :  { %v3750_v51 = vpop.f32.mrb[24].mxu0 }
 0x477   :  { %v3751_v36 = vpop.f32.mrb[25].mxu0 }
 0x478   :  { %v3752_v37 = vadd.f32 %v3751_v36, %v3750_v51  ;;  %v3753_v43 = vpop.f32.mrb[26].mxu0 }
 0x479   :  { %v3754_v30 = vpop.f32.mrb[27].mxu0 }
 0x491   :  { %v3596_v55 = vpop.f32.mrb[32].mxu1 }
 0x492   :  { %v3597_v41 = vpop.f32.mrb[33].mxu1 }
 0x493   :  { %v3598_v56 = vadd.f32 %v3597_v41, %v3596_v55  ;;  %v3599_v57 = vpop.f32.mrb[34].mxu1 }
 0x494   :  { %v3600_v58 = vpop.f32.mrb[35].mxu1 }
 0x495   :  { %v2473_v59 = vadd.f32 %v3598_v56, %v2412_v26 }
 0x496   :  { %v3794_v62 = vpop.f32.mrb[28].mxu0 }
 0x497   :  { %v3795_v61 = vpop.f32.mrb[29].mxu0 }
 0x498   :  { %v3796_v28 = vadd.f32 %v3795_v61, %v3794_v62  ;;  %v3797_v25 = vpop.f32.mrb[30].mxu0  ;;  %v3044_v61 = vunpack.c.l.bf16 %v4348_v0 }
 0x499   :  { %v3798_v46 = vpop.f32.mrb[31].mxu0  ;;  %v3070_v25 = vunpack.c.h.bf16 %v4388_v8 }
 0x4b1   :  { %v3618_v34 = vpop.f32.mrb[36].mxu1 }
 0x4b2   :  { %v3619_v27 = vpop.f32.mrb[37].mxu1 }
 0x4b3   :  { %v3620_v33 = vadd.f32 %v3619_v27, %v3618_v34  ;;  %v3621_v60 = vpop.f32.mrb[38].mxu1 }
 0x4b4   :  { %v3622_v63 = vpop.f32.mrb[39].mxu1 }
 0x4b5   :  { %v2534_v24 = vadd.f32 %v3620_v33, %v2473_v59  ;;  %v3465_v33 = vld [vmem:[%s4898_s6] ss:$0 sm:$0xff] }
 0x4d1   :  { %v3640_v53 = vpop.f32.mrb[40].mxu1 }
 0x4d2   :  { %v3641_v29 = vpop.f32.mrb[41].mxu1 }
 0x4d3   :  { %v3642_v44 = vadd.f32 %v3641_v29, %v3640_v53  ;;  %v3643_v39 = vpop.f32.mrb[42].mxu1 }
 0x4d4   :  { %v3644_v42 = vpop.f32.mrb[43].mxu1 }
 0x4d5   :  { %v2595_v49 = vadd.f32 %v3642_v44, %v2534_v24  ;;  %v3069_v24 = vunpack.c.l.bf16 %v4388_v8 }
 0x4d7   :  { %v2652_v52 = vadd.f32 %v3664_v54, %v2595_v49 }
 0x4f1   :  { %v3684_v31 = vpop.f32.mrb[44].mxu1 }
 0x4f2   :  { %v3685_v40 = vpop.f32.mrb[45].mxu1 }
 0x4f3   :  { %v3686_v47 = vadd.f32 %v3685_v40, %v3684_v31  ;;  %v3687_v48 = vpop.f32.mrb[46].mxu1 }
 0x4f4   :  { %v3688_v32 = vpop.f32.mrb[47].mxu1 }
 0x4f5   :  { %v2715_v45 = vadd.f32 %v3686_v47, %v2652_v52 }
 0x4f7   :  { %v2776_v26 = vadd.f32 %v3708_v35, %v2715_v45 }
 0x511   :  { %v3728_v55 = vpop.f32.mrb[48].mxu1 }
 0x512   :  { %v3729_v41 = vpop.f32.mrb[49].mxu1 }
 0x513   :  { %v3730_v56 = vadd.f32 %v3729_v41, %v3728_v55  ;;  %v3731_v57 = vpop.f32.mrb[50].mxu1 }
 0x514   :  { %v3732_v51 = vpop.f32.mrb[51].mxu1 }
 0x515   :  { %v2837_v58 = vadd.f32 %v3730_v56, %v2776_v26 }
 0x517   :  { %v2898_v36 = vadd.f32 %v3752_v37, %v2837_v58  ;;  %v3045_v37 = vunpack.c.h.bf16 %v4348_v0 }
 0x531   :  { %v3772_v59 = vpop.f32.mrb[52].mxu1 }
 0x532   :  { %v3773_v43 = vpop.f32.mrb[53].mxu1 }
 0x533   :  { %v3774_v30 = vadd.f32 %v3773_v43, %v3772_v59  ;;  %v3775_v34 = vpop.f32.mrb[54].mxu1 }
 0x534   :  { %v3776_v27 = vpop.f32.mrb[55].mxu1 }
 0x535   :  { %v2959_v54 = vadd.f32 %v3774_v30, %v2898_v36 }
 0x537   :  { %v3020_v60 = vadd.f32 %v3796_v28, %v2959_v54 }
 0x539   :  { %v3028_v62 = vadd.f32 %v3465_v33, %v3020_v60 }
 0x53b   :  { %v3029_v35 = vmax.f32 %v3028_v62, 0.0 }
 0x53d   :  { %v4809_v63 = vpack.c.bf16 %v3029_v35, %v3029_v35 }
 0x53e   :  { %4239 = dma.done.wait [#allocation5 + $0x1], 3072 }
 0x53f   :  { %4240 = vsyncadd [#allocation5 + $0x1], 4294964224  ;;  %v3094_v28 = vunpack.c.l.bf16 %v4428_v16  ;;  %v3095_v46 = vunpack.c.h.bf16 %v4428_v16  ;;  %v3046_v53 = vunpack.c.l.bf16 %v4353_v1  ;;  %v3047_v29 = vunpack.c.h.bf16 %v4353_v1  ;;  %s4250_s25 = smov [#allocation9]  }
 0x540   :  { %v3071_v44 = vunpack.c.l.bf16 %v4393_v9  ;;  %v3072_v0 = vunpack.c.h.bf16 %v4393_v9  ;;  %v3096_v39 = vunpack.c.l.bf16 %v4433_v17  ;;  %v3097_v8 = vunpack.c.h.bf16 %v4433_v17  ;;  %s3208_s27 = sshll.u32 %s4250_s25, 4  ;;  %s3209_s27 = int_to_ptr.vmem [resolvable:$true] %s3208_s27 }
 0x541   :  { %v3110_v42 = vmul.f32 %v3094_v28, %v3069_v24  ;;  %v3111_v49 = vmul.f32 %v3095_v46, %v3070_v25  ;;  %v3048_v52 = vunpack.c.l.bf16 %v4358_v2  ;;  %v3049_v31 = vunpack.c.h.bf16 %v4358_v2  ;;  %p4218_p3 = scmp.lt.s32.totalorder %s3209_s27, %s3209_s27 }
 0x542   :  { %v3112_v40 = vmul.f32 %v3096_v39, %v3071_v44  ;;  %v3113_v16 = vmul.f32 %v3097_v8, %v3072_v0  ;;  %v3073_v47 = vunpack.c.l.bf16 %v4398_v10  ;;  %v3074_v1 = vunpack.c.h.bf16 %v4398_v10 }
 0x543   :  { %v3126_v48 = vadd.f32 %v3110_v42, %v3044_v61  ;;  %v3127_v32 = vadd.f32 %v3111_v49, %v3045_v37  ;;  %v3098_v9 = vunpack.c.l.bf16 %v4438_v18  ;;  %v3099_v45 = vunpack.c.h.bf16 %v4438_v18 }
 0x544   :  { %v3128_v26 = vadd.f32 %v3112_v40, %v3046_v53  ;;  %v3129_v17 = vadd.f32 %v3113_v16, %v3047_v29  ;;  %v3050_v55 = vunpack.c.l.bf16 %v4363_v3  ;;  %v3075_v2 = vunpack.c.l.bf16 %v4403_v11 }
 0x545   :  { %v3142_v41 = vpack.c.bf16 %v3127_v32, %v3126_v48  ;;  %v3114_v56 = vmul.f32 %v3098_v9, %v3073_v47  ;;  %v3115_v57 = vmul.f32 %v3099_v45, %v3074_v1  ;;  %v3051_v51 = vunpack.c.h.bf16 %v4363_v3 }
 0x546   :  { %v3076_v58 = vunpack.c.h.bf16 %v4403_v11  ;;  %v3100_v10 = vunpack.c.l.bf16 %v4443_v19  ;;  %v3101_v36 = vunpack.c.h.bf16 %v4443_v19  ;;  %v3143_v59 = vpack.c.bf16 %v3129_v17, %v3128_v26 }
 0x547   :  { %3816 = vmatpush3.bf16.msra.mxu1 %v3142_v41  ;;  %v3130_v18 = vadd.f32 %v3114_v56, %v3048_v52  ;;  %v3131_v43 = vadd.f32 %v3115_v57, %v3049_v31  ;;  %v3077_v27 = vunpack.c.l.bf16 %v4408_v12  ;;  %v3078_v54 = vunpack.c.h.bf16 %v4408_v12  ;;  %v3152_v56 = vld [vmem:[%s4901_s9] sm:$0x1] }
 0x548   :  { %3817 = vmatprep.subr.bf16.mxu1 %v4248_v38  ;;  %v3116_v30 = vmul.f32 %v3100_v10, %v3075_v2  ;;  %v3117_v34 = vmul.f32 %v3101_v36, %v3076_v58  ;;  %v3052_v3 = vunpack.c.l.bf16 %v4368_v4  ;;  %v3053_v11 = vunpack.c.h.bf16 %v4368_v4  ;;  %v3150_v2 = vld [vmem:[%s4899_s7] sm:$0x1] }
 0x549   :  { %v3102_v33 = vunpack.c.l.bf16 %v4448_v20  ;;  %v3103_v19 = vunpack.c.h.bf16 %v4448_v20  ;;  %v3144_v60 = vpack.c.bf16 %v3131_v43, %v3130_v18  ;;  %v3079_v61 = vunpack.c.l.bf16 %v4413_v13 }
 0x54a   :  { %v3132_v62 = vadd.f32 %v3116_v30, %v3050_v55  ;;  %v3133_v35 = vadd.f32 %v3117_v34, %v3051_v51  ;;  %v3080_v25 = vunpack.c.h.bf16 %v4413_v13  ;;  %v3104_v12 = vunpack.c.l.bf16 %v4453_v21 }
 0x54b   :  { %3818 = vmatpush3.bf16.msra.mxu1 %v3143_v59  ;;  %v3118_v37 = vmul.f32 %v3102_v33, %v3077_v27  ;;  %v3119_v24 = vmul.f32 %v3103_v19, %v3078_v54  ;;  %v3054_v4 = vunpack.c.l.bf16 %v4373_v5  ;;  %v3055_v28 = vunpack.c.h.bf16 %v4373_v5 }
 0x54c   :  { %3819 = vmatprep.subr.bf16.mxu1 %v4248_v38  ;;  %v3105_v20 = vunpack.c.h.bf16 %v4453_v21  ;;  %v3120_v29 = vmul.f32 %v3104_v12, %v3079_v61  ;;  %v3081_v44 = vunpack.c.l.bf16 %v4418_v14  ;;  %v3082_v39 = vunpack.c.h.bf16 %v4418_v14 }
 0x54d   :  { %v3134_v46 = vadd.f32 %v3118_v37, %v3052_v3  ;;  %v3135_v53 = vadd.f32 %v3119_v24, %v3053_v11  ;;  %v3106_v13 = vunpack.c.l.bf16 %v4458_v22  ;;  %v3107_v8 = vunpack.c.h.bf16 %v4458_v22 }
 0x54e   :  { %v3121_v0 = vmul.f32 %v3105_v20, %v3080_v25  ;;  %v3145_v42 = vpack.c.bf16 %v3133_v35, %v3132_v62  ;;  %v3056_v5 = vunpack.c.l.bf16 %v4378_v6  ;;  %v3057_v21 = vunpack.c.h.bf16 %v4378_v6 }
 0x54f   :  { %3820 = vmatpush3.bf16.msra.mxu1 %v3144_v60  ;;  %v3146_v49 = vpack.c.bf16 %v3135_v53, %v3134_v46  ;;  %v3136_v52 = vadd.f32 %v3120_v29, %v3054_v4  ;;  %v3122_v40 = vmul.f32 %v3106_v13, %v3081_v44  ;;  %v3123_v16 = vmul.f32 %v3107_v8, %v3082_v39 }
 0x550   :  { %3821 = vmatprep.subr.bf16.mxu1 %v4248_v38  ;;  %v3137_v31 = vadd.f32 %v3121_v0, %v3055_v28  ;;  %v3083_v14 = vunpack.c.l.bf16 %v4423_v15  ;;  %v3084_v47 = vunpack.c.h.bf16 %v4423_v15  ;;  %v3108_v22 = vunpack.c.l.bf16 %v4463_v23 }
 0x551   :  { %v3109_v1 = vunpack.c.h.bf16 %v4463_v23  ;;  %v3058_v32 = vunpack.c.l.bf16 %v4383_v7  ;;  %v3059_v6 = vunpack.c.h.bf16 %v4383_v7  ;;  %v3138_v9 = vadd.f32 %v3122_v40, %v3056_v5  ;;  %v3151_v7 = vld [vmem:[%s4900_s8] sm:$0x1]  ;;  %s4213_s8 = scalar_lea.vmem %s3209_s27, 32 }
 0x552   :  { %v3147_v48 = vpack.c.bf16 %v3137_v31, %v3136_v52  ;;  %v3139_v45 = vadd.f32 %v3123_v16, %v3057_v21  ;;  %v3124_v26 = vmul.f32 %v3108_v22, %v3083_v14  ;;  %v3153_v57 = vmul.f32 %v3152_v56, %v3151_v7  ;;  %p4214_p2 = scmp.ne.s32.totalorder %s3209_s27, %s4213_s8  ;;  %p4219_p4 = scmp.lt.s32.totalorder %s4213_s8, %s4213_s8 }
 0x553   :  { %3822 = vmatpush3.bf16.msra.mxu1 %v3145_v42  ;;  %v3125_v17 = vmul.f32 %v3109_v1, %v3084_v47 }
 0x554   :  { %3823 = vmatprep.subr.bf16.mxu1 %v4248_v38  ;;  %v3148_v15 = vpack.c.bf16 %v3139_v45, %v3138_v9  ;;  %v3140_v55 = vadd.f32 %v3124_v26, %v3058_v32  ;;  %v3154_v51 = vadd.f32 %v3153_v57, %v3150_v2  ;;  %p4220_p5 = por %p4219_p4, %p4218_p3 }
 0x555   :  { %v3141_v41 = vadd.f32 %v3125_v17, %v3059_v6 }
 0x556   :  { %v3159_v58 = vrot.slane %v3154_v51, %v4684_v50  ;;  %p4221_p6 = pnand %p4220_p5, %p4214_p2 }
 0x557   :  { %3824 = vmatpush3.bf16.msra.mxu1 %v3146_v49  ;;  %v3149_v23 = vpack.c.bf16 %v3141_v41, %v3140_v55 }
 0x558   :  { %3825 = vmatprep.subr.bf16.mxu1 %v4248_v38 }
 0x55b   :  { %3826 = vmatpush3.bf16.msra.mxu1 %v3147_v48 }
 0x55c   :  { %3827 = vmatprep.subr.bf16.mxu1 %v4248_v38 }
 0x55f   :  { %3828 = vmatpush3.bf16.msra.mxu1 %v3148_v15 }
 0x560   :  { %3829 = vmatprep.subr.bf16.mxu1 %v4248_v38 }
 0x563   :  { %3830 = vmatpush3.bf16.msra.mxu1 %v3149_v23 }
 0x566   :  { %3832 = vmatmul.mubr.bf16.vlgmr.msra.gmra.mrb[56].mxu1 %v4809_v63 }
 0x639   :  { %v3195_v38 = vpop.f32.mrb[56].mxu1 }
 0x63a   :  { %v3196_v63 = vadd.f32 %v3195_v38, %v3159_v58  ;;  %v3833_v10 = vpop.f32.mrb[57].mxu1 }
 0x63b   :  { %v3198_v36 = vpop.f32.mrb[58].mxu1 }
 0x63c   :  { %3201 = vst [vmem:[#allocation9] sm:$0x3] %v3196_v63  ;;  %v3834_v59 = vpop.f32.mrb[59].mxu1 }
 0x63d   :  { %4224 = shalt.err (!%p4221_p6)
}
 0x63e   :  { %s4225_s28 = scalar_lea.hbm %s4905_s13, 32 }
 0x63f   :  { %p4226_p7 = scmp.ne.s32.totalorder %s4905_s13, %s4225_s28  ;;  %p4229_p8 = scmp.lt.u32.totalorder %s4225_s28, %s4905_s13 }
 0x641   :  { %p4231_p9 = pnand %p4229_p8, %p4226_p7 }
 0x643   :  { %4234 = shalt.err (!%p4231_p9)
}
 0x644   :  { %3211 = dma.vmem_to_hbm [thread:$0]  %s3209_s27, 32, %s4905_s13, [#allocation8]  }
 0x645   :  { %4241 = dma.done.wait [#allocation8], 32  }
 0x646   :  { %4242 = vsyncadd [#allocation8], 4294967264 }
 0x647   :  { %3215 = vsyncpa [#allocation7], 1 }
 0x648   :  { %3216 = vsyncpa [#allocation8], 1 }
 0x649   :  { %3217 = vsyncmov [#allocation5] }
 0x64c   :  { %s3218_s15 = vpop.sfrf %3217 }
 0x64d   :  { %p3466_p10 = scmp.ne.s32.totalorder %s3218_s15, 0 }
 0x64f   :  { %3222 = shalt.err (%p3466_p10)  }
 0x650   :  { %3224 = vsyncmov [#allocation5 + $0x1] }
 0x653   :  { %s3225_s16 = vpop.sfrf %3224 }
 0x654   :  { %p3467_p11 = scmp.ne.s32.totalorder %s3225_s16, 0 }
 0x656   :  { %3229 = shalt.err (%p3467_p11)  }

</bundles_post_ra>
